<compile_context>
chip_gen: v5e
topology: v5e:2x2
jax: 0.10.0
libtpu: 0.0.40
codegen_flags: <defaults>
</compile_context>

<pallas_src>
import jax
import jax.numpy as jnp
from jax import lax
from jax.experimental import pallas as pl
from jax.experimental.pallas import tpu as pltpu

K = 5  # conv kernel size


# ----------------------------------------------------------------------------
# Fused Pallas kernel: whole Net.forward, 8 matmuls total, VMEM/vreg resident.
# ----------------------------------------------------------------------------
def _net_fused_kernel(x_ref, t1_ref, s1e_ref, s1o_ref, b1_ref,
                      t2_ref, s2e_ref, s2o_ref, b2_ref,
                      fc1w_ref, fc1b_ref, fc2w_ref, fc2b_ref,
                      out_ref):
    """Layouts (lane = last dim):
       x_ref    [TB, 28, 28]        input (C=1 squeezed)
       t1_ref   [140, 240]          conv1 Toeplitz, rows = di*28 + w,
                                    cols = [even j | odd j] x 10 channels
       s1e/s1o  [12*TB, 24*TB]      0/1 H-pool row selectors (b-major -> H-major)
       b1_ref   [1, 120]            conv1 bias tiled over pooled w
       t2_ref   [600, 160]          conv2 Toeplitz, rows = di*120 + w*10 + c,
                                    cols = [even j | odd j] x 20 channels
       s2e/s2o  [4*TB, 8*TB]        0/1 H-pool row selectors (H-major -> H-major)
       b2_ref   [1, 80]             conv2 bias tiled over pooled w
       fc1w_ref [320, 50]  fc2w_ref [50, 10]
    """
    f32 = jnp.float32
    tb = x_ref.shape[0]

    # ---- conv1 (1->10, k=5, valid): batch + di folded into one matmul -------
    # LHS row (b*24 + i), lane (di*28 + w) = x[b, i+di, w]
    lhs1 = jnp.concatenate(
        [x_ref[:, di:di + 24, :].reshape(tb * 24, 28) for di in range(K)],
        axis=1)                                                   # [24*TB, 140]
    c1 = jnp.dot(lhs1, t1_ref[...], preferred_element_type=f32)   # [24*TB, 240]

    # ---- 2x2 maxpool + bias + relu ------------------------------------------
    # H-pool: exact 0/1 selection matmuls; output rows become H-major (i*TB+b).
    h1p = jnp.maximum(jnp.dot(s1e_ref[...], c1, preferred_element_type=f32),
                      jnp.dot(s1o_ref[...], c1, preferred_element_type=f32))
    # W-pool: Toeplitz columns are [even j | odd j], so pool = max of halves.
    h1 = jnp.maximum(h1p[:, :120], h1p[:, 120:])                  # [12*TB, 120]
    h1 = jnp.maximum(h1 + b1_ref[...], 0.0)                       # relu

    # ---- conv2 (10->20, k=5): one matmul; di-slabs are contiguous row slices -
    # because h1 rows are H-major: slab_di[r] = h1[r + di*TB].
    lhs2 = jnp.concatenate(
        [h1[di * tb:(di + 8) * tb, :] for di in range(K)], axis=1)  # [8*TB, 600]
    c2 = jnp.dot(lhs2, t2_ref[...], preferred_element_type=f32)     # [8*TB, 160]
    # TODO(synk): Dropout2d after conv2 is an inference-mode identity here.

    c2p = jnp.maximum(jnp.dot(s2e_ref[...], c2, preferred_element_type=f32),
                      jnp.dot(s2o_ref[...], c2, preferred_element_type=f32))
    c2w = jnp.maximum(c2p[:, :80], c2p[:, 80:])                   # [4*TB, 80]
    c2w = jnp.maximum(c2w + b2_ref[...], 0.0)                     # relu

    # ---- flatten (NHWC order) via lane-concat of contiguous row blocks -------
    # flat[b, h*80 + w*20 + c]  (fc1 weights pre-permuted to match)
    flat = jnp.concatenate(
        [c2w[h * tb:(h + 1) * tb, :] for h in range(4)], axis=1)  # [TB, 320]

    # ---- fc1 + relu, (dropout = identity), fc2, log_softmax ------------------
    h = jnp.dot(flat, fc1w_ref[...], preferred_element_type=f32) + fc1b_ref[...]
    h = jnp.maximum(h, 0.0)                                       # [TB, 50]
    # TODO(synk): training-mode F.dropout not implemented (inference identity).
    logits = jnp.dot(h, fc2w_ref[...], preferred_element_type=f32) + fc2b_ref[...]
    z = logits - jnp.max(logits, axis=-1, keepdims=True)
    out_ref[...] = (z - jnp.log(jnp.sum(jnp.exp(z), axis=-1, keepdims=True))
                    ).astype(out_ref.dtype)


# ----------------------------------------------------------------------------
# Wrapper: batch grid (parallel) with VMEM-resident weights.
# ----------------------------------------------------------------------------
def net_forward(x_nchw, kp):
    B, C, H, W = x_nchw.shape
    assert (C, H, W) == (1, 28, 28), "Net.forward implies 1x28x28 inputs"
    tb = kp["s1e"].shape[0] // 12          # batch tile the params were built for
    assert B % tb == 0, "batch must be divisible by the batch tile"
    assert tb == B or tb % 8 == 0, "partial batch tiles must be 8-aligned"
    x3 = x_nchw.reshape(B, 28, 28)         # C == 1 -> pure reshape, no transpose

    def const_spec(arr):                   # weight stays resident across grid steps
        shape = arr.shape
        return pl.BlockSpec(shape, lambda i, _s=shape: (0,) * len(_s))

    return pl.pallas_call(
        _net_fused_kernel,
        out_shape=jax.ShapeDtypeStruct((B, 10), jnp.float32),
        grid=(B // tb,),
        in_specs=[
            pl.BlockSpec((tb, 28, 28), lambda i: (i, 0, 0)),
            const_spec(kp["t1"]), const_spec(kp["s1e"]), const_spec(kp["s1o"]),
            const_spec(kp["b1"]),
            const_spec(kp["t2"]), const_spec(kp["s2e"]), const_spec(kp["s2o"]),
            const_spec(kp["b2"]),
            const_spec(kp["fc1_w"]), const_spec(kp["fc1_b"]),
            const_spec(kp["fc2_w"]), const_spec(kp["fc2_b"]),
        ],
        out_specs=pl.BlockSpec((tb, 10), lambda i: (i, 0)),
        compiler_params=pltpu.CompilerParams(
            dimension_semantics=("parallel",)),   # shards batch tiles across TCs (v7x)
    )(x3, kp["t1"], kp["s1e"], kp["s1o"], kp["b1"],
      kp["t2"], kp["s2e"], kp["s2o"], kp["b2"],
      kp["fc1_w"], kp["fc1_b"], kp["fc2_w"], kp["fc2_b"])


# ----------------------------------------------------------------------------
# Parameter preparation: PyTorch layouts -> kernel layouts (one-time).
# ----------------------------------------------------------------------------
def _conv_toeplitz(w_dj_last, in_len, out_len):
    """w: [5(di), 5(dj), C, O] -> T: [5*in_len*C, out_len*O] with
       T[(di*in_len + w)*C + c, col(j,o)] = w[di, w-j, c, o] for 0 <= w-j <= 4,
       and output columns permuted to [even j | odd j] (each j carries O lanes)."""
    K_, _, Cin, Cout = w_dj_last.shape
    w_idx = jnp.arange(in_len)[:, None]
    j_idx = jnp.arange(out_len)[None, :]
    dj = w_idx - j_idx
    valid = (dj >= 0) & (dj < K_)
    t = w_dj_last[:, jnp.clip(dj, 0, K_ - 1), :, :]        # [5, in, out, C, O]
    t = jnp.where(valid[None, :, :, None, None], t, 0.0)
    t = jnp.transpose(t, (0, 1, 3, 2, 4))                  # [5, in, C, out, O]
    t = jnp.concatenate([t[:, :, :, 0::2, :], t[:, :, :, 1::2, :]], axis=3)
    return t.reshape(K_ * in_len * Cin, out_len * Cout)


def _make_pool_selectors(tb):
    """Exact 0/1 row-selection matrices for the H-direction 2x2 max-pools."""
    # conv1: raw rows are batch-major (b*24 + i_raw); pooled rows H-major (i*tb + b).
    i = jnp.arange(12 * tb) // tb
    b = jnp.arange(12 * tb) % tb
    cols = jnp.arange(24 * tb)[None, :]
    s1e = (cols == (b * 24 + 2 * i)[:, None]).astype(jnp.float32)
    s1o = (cols == (b * 24 + 2 * i + 1)[:, None]).astype(jnp.float32)
    # conv2: raw rows are H-major (i_out*tb + b); pooled rows H-major (i2*tb + b).
    i2 = jnp.arange(4 * tb) // tb
    b2 = jnp.arange(4 * tb) % tb
    cols2 = jnp.arange(8 * tb)[None, :]
    s2e = (cols2 == (2 * i2 * tb + b2)[:, None]).astype(jnp.float32)
    s2o = (cols2 == ((2 * i2 + 1) * tb + b2)[:, None]).astype(jnp.float32)
    return s1e, s1o, s2e, s2o


def prepare_kernel_params(p, batch_tile):
    # conv weights: PyTorch [O, I, kh, kw] -> [kh(di), kw(dj), I, O]
    w1 = jnp.transpose(p["conv1_w"], (2, 3, 1, 0))
    w2 = jnp.transpose(p["conv2_w"], (2, 3, 1, 0))
    t1 = _conv_toeplitz(w1, 28, 24)                        # [140, 240]
    t2 = _conv_toeplitz(w2, 12, 8)                         # [600, 160]
    b1 = jnp.tile(p["conv1_b"], 12).reshape(1, 120)        # post-W-pool lanes: w*10+c
    b2 = jnp.tile(p["conv2_b"], 4).reshape(1, 80)          # post-W-pool lanes: w*20+c
    s1e, s1o, s2e, s2o = _make_pool_selectors(batch_tile)
    # fc1: permute input features from NCHW (c*16 + h*4 + w) to the kernel's
    # NHWC flatten order ((h*4 + w)*20 + c), and transpose to [in, out].
    fc1 = jnp.transpose(p["fc1_w"].reshape(50, 20, 4, 4), (2, 3, 1, 0)).reshape(320, 50)
    return {
        "t1": t1, "s1e": s1e, "s1o": s1o, "b1": b1,
        "t2": t2, "s2e": s2e, "s2o": s2o, "b2": b2,
        "fc1_w": fc1, "fc1_b": p["fc1_b"].reshape(1, 50),
        "fc2_w": p["fc2_w"].T, "fc2_b": p["fc2_b"].reshape(1, 10),
    }


def init_torch_params(key):
    ks = jax.random.split(key, 8)
    return {
        "conv1_w": 0.1 * jax.random.normal(ks[0], (10, 1, 5, 5), jnp.float32),
        "conv1_b": 0.1 * jax.random.normal(ks[1], (10,), jnp.float32),
        "conv2_w": 0.1 * jax.random.normal(ks[2], (20, 10, 5, 5), jnp.float32),
        "conv2_b": 0.1 * jax.random.normal(ks[3], (20,), jnp.float32),
        "fc1_w": 0.05 * jax.random.normal(ks[4], (50, 320), jnp.float32),
        "fc1_b": 0.05 * jax.random.normal(ks[5], (50,), jnp.float32),
        "fc2_w": 0.05 * jax.random.normal(ks[6], (10, 50), jnp.float32),
        "fc2_b": 0.05 * jax.random.normal(ks[7], (10,), jnp.float32),
    }


# ----------------------------------------------------------------------------
# Pure-JAX reference (mirrors the PyTorch module, inference mode).
# ----------------------------------------------------------------------------
def reference_forward(x, p):
    dn = ("NCHW", "OIHW", "NCHW")
    a = lax.conv_general_dilated(x, p["conv1_w"], (1, 1), "VALID",
                                 dimension_numbers=dn)
    a = a + p["conv1_b"][None, :, None, None]
    a = lax.reduce_window(a, -jnp.inf, lax.max, (1, 1, 2, 2), (1, 1, 2, 2), "VALID")
    a = jnp.maximum(a, 0.0)
    a = lax.conv_general_dilated(a, p["conv2_w"], (1, 1), "VALID",
                                 dimension_numbers=dn)
    a = a + p["conv2_b"][None, :, None, None]
    a = lax.reduce_window(a, -jnp.inf, lax.max, (1, 1, 2, 2), (1, 1, 2, 2), "VALID")
    a = jnp.maximum(a, 0.0)
    a = a.reshape(a.shape[0], 320)
    a = jnp.maximum(a @ p["fc1_w"].T + p["fc1_b"], 0.0)
    a = a @ p["fc2_w"].T + p["fc2_b"]
    return jax.nn.log_softmax(a, axis=-1)


if __name__ == "__main__":
    key = jax.random.PRNGKey(0)
    pkey, xkey = jax.random.split(key)
    torch_params = init_torch_params(pkey)

    B = 2
    kparams = prepare_kernel_params(torch_params, batch_tile=B)  # one-time transform
    x = jax.random.normal(xkey, (B, 1, 28, 28), jnp.float32)

    logits = jax.jit(net_forward)(x, kparams)
    logits = jax.block_until_ready(logits)

    assert logits.shape == (B, 10)
    assert bool(jnp.all(jnp.isfinite(logits)))
    # log_softmax rows should exponentiate-and-sum to 1.
    assert bool(jnp.allclose(jnp.sum(jnp.exp(logits), axis=-1), 1.0, atol=1e-4))

    # Cross-check against a pure-JAX reference of the same module (all-f32 path).
    ref = jax.jit(reference_forward)(x, torch_params)
    assert bool(jnp.allclose(logits, ref, atol=1e-4, rtol=1e-4)), (
        "max abs diff = %e" % float(jnp.max(jnp.abs(logits - ref))))

    print("KERNEL_OK")
</pallas_src>

<mosaic_0001>
module attributes {stable_mosaic.version = 11 : i64} {
  func.func @_net_fused_kernel(%arg0: i32, %arg1: memref<2x28x28xf32, #tpu.memory_space<vmem>>, %arg2: memref<140x240xf32, #tpu.memory_space<vmem>>, %arg3: memref<24x48xf32, #tpu.memory_space<vmem>>, %arg4: memref<24x48xf32, #tpu.memory_space<vmem>>, %arg5: memref<1x120xf32, #tpu.memory_space<vmem>>, %arg6: memref<600x160xf32, #tpu.memory_space<vmem>>, %arg7: memref<8x16xf32, #tpu.memory_space<vmem>>, %arg8: memref<8x16xf32, #tpu.memory_space<vmem>>, %arg9: memref<1x80xf32, #tpu.memory_space<vmem>>, %arg10: memref<320x50xf32, #tpu.memory_space<vmem>>, %arg11: memref<1x50xf32, #tpu.memory_space<vmem>>, %arg12: memref<50x10xf32, #tpu.memory_space<vmem>>, %arg13: memref<1x10xf32, #tpu.memory_space<vmem>>, %arg14: memref<2x10xf32, #tpu.memory_space<vmem>>) attributes {dimension_semantics = [#tpu.dimension_semantics<parallel>], iteration_bounds = array<i64: 1>, scalar_prefetch = 0 : i64, scratch_operands = 0 : i64, tpu.core_type = #tpu.core_type<tc>, window_params = [{transform_indices = @transform_0, window_bounds = array<i64: 2, 28, 28>}, {pipeline_mode = #tpu.pipeline_mode<synchronous>, transform_indices = @transform_1, window_bounds = array<i64: 140, 240>}, {pipeline_mode = #tpu.pipeline_mode<synchronous>, transform_indices = @transform_2, window_bounds = array<i64: 24, 48>}, {pipeline_mode = #tpu.pipeline_mode<synchronous>, transform_indices = @transform_3, window_bounds = array<i64: 24, 48>}, {pipeline_mode = #tpu.pipeline_mode<synchronous>, transform_indices = @transform_4, window_bounds = array<i64: 1, 120>}, {pipeline_mode = #tpu.pipeline_mode<synchronous>, transform_indices = @transform_5, window_bounds = array<i64: 600, 160>}, {pipeline_mode = #tpu.pipeline_mode<synchronous>, transform_indices = @transform_6, window_bounds = array<i64: 8, 16>}, {pipeline_mode = #tpu.pipeline_mode<synchronous>, transform_indices = @transform_7, window_bounds = array<i64: 8, 16>}, {pipeline_mode = #tpu.pipeline_mode<synchronous>, transform_indices = @transform_8, window_bounds = array<i64: 1, 80>}, {pipeline_mode = #tpu.pipeline_mode<synchronous>, transform_indices = @transform_9, window_bounds = array<i64: 320, 50>}, {pipeline_mode = #tpu.pipeline_mode<synchronous>, transform_indices = @transform_10, window_bounds = array<i64: 1, 50>}, {pipeline_mode = #tpu.pipeline_mode<synchronous>, transform_indices = @transform_11, window_bounds = array<i64: 50, 10>}, {pipeline_mode = #tpu.pipeline_mode<synchronous>, transform_indices = @transform_12, window_bounds = array<i64: 1, 10>}, {transform_indices = @transform_13, window_bounds = array<i64: 2, 10>}]} {
    %c0 = arith.constant 0 : index
    %c0_0 = arith.constant 0 : index
    %c0_1 = arith.constant 0 : index
    %0 = vector.load %arg1[%c0, %c0_0, %c0_1] : memref<2x28x28xf32, #tpu.memory_space<vmem>>, vector<2x24x28xf32>
    %1 = vector.shape_cast %0 : vector<2x24x28xf32> to vector<48x28xf32>
    %c0_2 = arith.constant 0 : index
    %c1 = arith.constant 1 : index
    %c0_3 = arith.constant 0 : index
    %2 = vector.load %arg1[%c0_2, %c1, %c0_3] : memref<2x28x28xf32, #tpu.memory_space<vmem>>, vector<2x24x28xf32>
    %3 = vector.shape_cast %2 : vector<2x24x28xf32> to vector<48x28xf32>
    %c0_4 = arith.constant 0 : index
    %c2 = arith.constant 2 : index
    %c0_5 = arith.constant 0 : index
    %4 = vector.load %arg1[%c0_4, %c2, %c0_5] : memref<2x28x28xf32, #tpu.memory_space<vmem>>, vector<2x24x28xf32>
    %5 = vector.shape_cast %4 : vector<2x24x28xf32> to vector<48x28xf32>
    %c0_6 = arith.constant 0 : index
    %c3 = arith.constant 3 : index
    %c0_7 = arith.constant 0 : index
    %6 = vector.load %arg1[%c0_6, %c3, %c0_7] : memref<2x28x28xf32, #tpu.memory_space<vmem>>, vector<2x24x28xf32>
    %7 = vector.shape_cast %6 : vector<2x24x28xf32> to vector<48x28xf32>
    %c0_8 = arith.constant 0 : index
    %c4 = arith.constant 4 : index
    %c0_9 = arith.constant 0 : index
    %8 = vector.load %arg1[%c0_8, %c4, %c0_9] : memref<2x28x28xf32, #tpu.memory_space<vmem>>, vector<2x24x28xf32>
    %9 = vector.shape_cast %8 : vector<2x24x28xf32> to vector<48x28xf32>
    %10 = tpu.concatenate %1, %3, %5, %7, %9 in 1 : vector<48x28xf32>, vector<48x28xf32>, vector<48x28xf32>, vector<48x28xf32>, vector<48x28xf32> -> vector<48x140xf32>
    %c0_10 = arith.constant 0 : index
    %c0_11 = arith.constant 0 : index
    %11 = vector.load %arg2[%c0_10, %c0_11] : memref<140x240xf32, #tpu.memory_space<vmem>>, vector<140x240xf32>
    %cst = arith.constant dense<0.000000e+00> : vector<48x240xf32>
    %12 = tpu.matmul %10, %11, %cst {dimension_numbers = #tpu.dot_dimension_numbers<[1], [0], [0], [1], [0, 0, 1, 1], [], []>} : vector<48x140xf32>, vector<140x240xf32>, vector<48x240xf32> -> vector<48x240xf32>
    %c0_12 = arith.constant 0 : index
    %c0_13 = arith.constant 0 : index
    %13 = vector.load %arg3[%c0_12, %c0_13] : memref<24x48xf32, #tpu.memory_space<vmem>>, vector<24x48xf32>
    %cst_14 = arith.constant dense<0.000000e+00> : vector<24x240xf32>
    %14 = tpu.matmul %13, %12, %cst_14 {dimension_numbers = #tpu.dot_dimension_numbers<[1], [0], [0], [1], [0, 0, 1, 1], [], []>} : vector<24x48xf32>, vector<48x240xf32>, vector<24x240xf32> -> vector<24x240xf32>
    %c0_15 = arith.constant 0 : index
    %c0_16 = arith.constant 0 : index
    %15 = vector.load %arg4[%c0_15, %c0_16] : memref<24x48xf32, #tpu.memory_space<vmem>>, vector<24x48xf32>
    %cst_17 = arith.constant dense<0.000000e+00> : vector<24x240xf32>
    %16 = tpu.matmul %15, %12, %cst_17 {dimension_numbers = #tpu.dot_dimension_numbers<[1], [0], [0], [1], [0, 0, 1, 1], [], []>} : vector<24x48xf32>, vector<48x240xf32>, vector<24x240xf32> -> vector<24x240xf32>
    %17 = arith.maximumf %14, %16 : vector<24x240xf32>
    %18 = vector.extract_strided_slice %17 {offsets = [0, 0], sizes = [24, 120], strides = [1, 1]} : vector<24x240xf32> to vector<24x120xf32>
    %19 = vector.extract_strided_slice %17 {offsets = [0, 120], sizes = [24, 120], strides = [1, 1]} : vector<24x240xf32> to vector<24x120xf32>
    %20 = arith.maximumf %18, %19 : vector<24x120xf32>
    %c0_18 = arith.constant 0 : index
    %c0_19 = arith.constant 0 : index
    %21 = vector.load %arg5[%c0_18, %c0_19] : memref<1x120xf32, #tpu.memory_space<vmem>>, vector<1x120xf32>
    %22 = vector.broadcast %21 : vector<1x120xf32> to vector<24x120xf32>
    %23 = arith.addf %20, %22 : vector<24x120xf32>
    %cst_20 = arith.constant 0.000000e+00 : f32
    %24 = vector.broadcast %cst_20 : f32 to vector<24x120xf32>
    %25 = arith.maximumf %23, %24 : vector<24x120xf32>
    %26 = vector.extract_strided_slice %25 {offsets = [0, 0], sizes = [16, 120], strides = [1, 1]} : vector<24x120xf32> to vector<16x120xf32>
    %27 = vector.extract_strided_slice %25 {offsets = [2, 0], sizes = [16, 120], strides = [1, 1]} : vector<24x120xf32> to vector<16x120xf32>
    %28 = vector.extract_strided_slice %25 {offsets = [4, 0], sizes = [16, 120], strides = [1, 1]} : vector<24x120xf32> to vector<16x120xf32>
    %29 = vector.extract_strided_slice %25 {offsets = [6, 0], sizes = [16, 120], strides = [1, 1]} : vector<24x120xf32> to vector<16x120xf32>
    %30 = vector.extract_strided_slice %25 {offsets = [8, 0], sizes = [16, 120], strides = [1, 1]} : vector<24x120xf32> to vector<16x120xf32>
    %31 = tpu.concatenate %26, %27, %28, %29, %30 in 1 : vector<16x120xf32>, vector<16x120xf32>, vector<16x120xf32>, vector<16x120xf32>, vector<16x120xf32> -> vector<16x600xf32>
    %c0_21 = arith.constant 0 : index
    %c0_22 = arith.constant 0 : index
    %32 = vector.load %arg6[%c0_21, %c0_22] : memref<600x160xf32, #tpu.memory_space<vmem>>, vector<600x160xf32>
    %cst_23 = arith.constant dense<0.000000e+00> : vector<16x160xf32>
    %33 = tpu.matmul %31, %32, %cst_23 {dimension_numbers = #tpu.dot_dimension_numbers<[1], [0], [0], [1], [0, 0, 1, 1], [], []>} : vector<16x600xf32>, vector<600x160xf32>, vector<16x160xf32> -> vector<16x160xf32>
    %c0_24 = arith.constant 0 : index
    %c0_25 = arith.constant 0 : index
    %34 = vector.load %arg7[%c0_24, %c0_25] : memref<8x16xf32, #tpu.memory_space<vmem>>, vector<8x16xf32>
    %cst_26 = arith.constant dense<0.000000e+00> : vector<8x160xf32>
    %35 = tpu.matmul %34, %33, %cst_26 {dimension_numbers = #tpu.dot_dimension_numbers<[1], [0], [0], [1], [0, 0, 1, 1], [], []>} : vector<8x16xf32>, vector<16x160xf32>, vector<8x160xf32> -> vector<8x160xf32>
    %c0_27 = arith.constant 0 : index
    %c0_28 = arith.constant 0 : index
    %36 = vector.load %arg8[%c0_27, %c0_28] : memref<8x16xf32, #tpu.memory_space<vmem>>, vector<8x16xf32>
    %cst_29 = arith.constant dense<0.000000e+00> : vector<8x160xf32>
    %37 = tpu.matmul %36, %33, %cst_29 {dimension_numbers = #tpu.dot_dimension_numbers<[1], [0], [0], [1], [0, 0, 1, 1], [], []>} : vector<8x16xf32>, vector<16x160xf32>, vector<8x160xf32> -> vector<8x160xf32>
    %38 = arith.maximumf %35, %37 : vector<8x160xf32>
    %39 = vector.extract_strided_slice %38 {offsets = [0, 0], sizes = [8, 80], strides = [1, 1]} : vector<8x160xf32> to vector<8x80xf32>
    %40 = vector.extract_strided_slice %38 {offsets = [0, 80], sizes = [8, 80], strides = [1, 1]} : vector<8x160xf32> to vector<8x80xf32>
    %41 = arith.maximumf %39, %40 : vector<8x80xf32>
    %c0_30 = arith.constant 0 : index
    %c0_31 = arith.constant 0 : index
    %42 = vector.load %arg9[%c0_30, %c0_31] : memref<1x80xf32, #tpu.memory_space<vmem>>, vector<1x80xf32>
    %43 = vector.broadcast %42 : vector<1x80xf32> to vector<8x80xf32>
    %44 = arith.addf %41, %43 : vector<8x80xf32>
    %cst_32 = arith.constant 0.000000e+00 : f32
    %45 = vector.broadcast %cst_32 : f32 to vector<8x80xf32>
    %46 = arith.maximumf %44, %45 : vector<8x80xf32>
    %47 = vector.extract_strided_slice %46 {offsets = [0, 0], sizes = [2, 80], strides = [1, 1]} : vector<8x80xf32> to vector<2x80xf32>
    %48 = vector.extract_strided_slice %46 {offsets = [2, 0], sizes = [2, 80], strides = [1, 1]} : vector<8x80xf32> to vector<2x80xf32>
    %49 = vector.extract_strided_slice %46 {offsets = [4, 0], sizes = [2, 80], strides = [1, 1]} : vector<8x80xf32> to vector<2x80xf32>
    %50 = vector.extract_strided_slice %46 {offsets = [6, 0], sizes = [2, 80], strides = [1, 1]} : vector<8x80xf32> to vector<2x80xf32>
    %51 = tpu.concatenate %47, %48, %49, %50 in 1 : vector<2x80xf32>, vector<2x80xf32>, vector<2x80xf32>, vector<2x80xf32> -> vector<2x320xf32>
    %c0_33 = arith.constant 0 : index
    %c0_34 = arith.constant 0 : index
    %52 = vector.load %arg10[%c0_33, %c0_34] : memref<320x50xf32, #tpu.memory_space<vmem>>, vector<320x50xf32>
    %cst_35 = arith.constant dense<0.000000e+00> : vector<2x50xf32>
    %53 = tpu.matmul %51, %52, %cst_35 {dimension_numbers = #tpu.dot_dimension_numbers<[1], [0], [0], [1], [0, 0, 1, 1], [], []>} : vector<2x320xf32>, vector<320x50xf32>, vector<2x50xf32> -> vector<2x50xf32>
    %c0_36 = arith.constant 0 : index
    %c0_37 = arith.constant 0 : index
    %54 = vector.load %arg11[%c0_36, %c0_37] : memref<1x50xf32, #tpu.memory_space<vmem>>, vector<1x50xf32>
    %55 = vector.broadcast %54 : vector<1x50xf32> to vector<2x50xf32>
    %56 = arith.addf %53, %55 : vector<2x50xf32>
    %cst_38 = arith.constant 0.000000e+00 : f32
    %57 = vector.broadcast %cst_38 : f32 to vector<2x50xf32>
    %58 = arith.maximumf %56, %57 : vector<2x50xf32>
    %c0_39 = arith.constant 0 : index
    %c0_40 = arith.constant 0 : index
    %59 = vector.load %arg12[%c0_39, %c0_40] : memref<50x10xf32, #tpu.memory_space<vmem>>, vector<50x10xf32>
    %cst_41 = arith.constant dense<0.000000e+00> : vector<2x10xf32>
    %60 = tpu.matmul %58, %59, %cst_41 {dimension_numbers = #tpu.dot_dimension_numbers<[1], [0], [0], [1], [0, 0, 1, 1], [], []>} : vector<2x50xf32>, vector<50x10xf32>, vector<2x10xf32> -> vector<2x10xf32>
    %c0_42 = arith.constant 0 : index
    %c0_43 = arith.constant 0 : index
    %61 = vector.load %arg13[%c0_42, %c0_43] : memref<1x10xf32, #tpu.memory_space<vmem>>, vector<1x10xf32>
    %62 = vector.broadcast %61 : vector<1x10xf32> to vector<2x10xf32>
    %63 = arith.addf %60, %62 : vector<2x10xf32>
    %cst_44 = arith.constant dense<0xFF800000> : vector<2xf32>
    %64 = vector.multi_reduction <maximumf>, %63, %cst_44 [1] : vector<2x10xf32> to vector<2xf32>
    %65 = vector.shape_cast %64 : vector<2xf32> to vector<2x1xf32>
    %66 = vector.broadcast %65 : vector<2x1xf32> to vector<2x10xf32>
    %67 = arith.subf %63, %66 : vector<2x10xf32>
    %68 = math.exp %67 : vector<2x10xf32>
    %cst_45 = arith.constant dense<0.000000e+00> : vector<2xf32>
    %69 = vector.multi_reduction <add>, %68, %cst_45 [1] : vector<2x10xf32> to vector<2xf32>
    %70 = vector.shape_cast %69 : vector<2xf32> to vector<2x1xf32>
    %71 = math.log %70 : vector<2x1xf32>
    %72 = vector.broadcast %71 : vector<2x1xf32> to vector<2x10xf32>
    %73 = arith.subf %67, %72 : vector<2x10xf32>
    %c0_46 = arith.constant 0 : index
    %c0_47 = arith.constant 0 : index
    %74 = vector.load %arg14[%c0_46, %c0_47] : memref<2x10xf32, #tpu.memory_space<vmem>>, vector<2x10xf32>
    tpu.vector_store %arg14[%c0_46, %c0_47], %73 {strides = array<i32>} : memref<2x10xf32, #tpu.memory_space<vmem>>, vector<2x10xf32>,
    return
  }
  func.func @transform_0(%arg0: i32) -> (i32, i32, i32) {
    %c0_i32 = arith.constant 0 : i32
    %c0_i32_0 = arith.constant 0 : i32
    %c0_i32_1 = arith.constant 0 : i32
    return %arg0, %c0_i32, %c0_i32_0 : i32, i32, i32
  }
  func.func @transform_1(%arg0: i32) -> (i32, i32) {
    %c0_i32 = arith.constant 0 : i32
    %c0_i32_0 = arith.constant 0 : i32
    %c0_i32_1 = arith.constant 0 : i32
    return %c0_i32, %c0_i32_0 : i32, i32
  }
  func.func @transform_2(%arg0: i32) -> (i32, i32) {
    %c0_i32 = arith.constant 0 : i32
    %c0_i32_0 = arith.constant 0 : i32
    %c0_i32_1 = arith.constant 0 : i32
    return %c0_i32, %c0_i32_0 : i32, i32
  }
  func.func @transform_3(%arg0: i32) -> (i32, i32) {
    %c0_i32 = arith.constant 0 : i32
    %c0_i32_0 = arith.constant 0 : i32
    %c0_i32_1 = arith.constant 0 : i32
    return %c0_i32, %c0_i32_0 : i32, i32
  }
  func.func @transform_4(%arg0: i32) -> (i32, i32) {
    %c0_i32 = arith.constant 0 : i32
    %c0_i32_0 = arith.constant 0 : i32
    %c0_i32_1 = arith.constant 0 : i32
    return %c0_i32, %c0_i32_0 : i32, i32
  }
  func.func @transform_5(%arg0: i32) -> (i32, i32) {
    %c0_i32 = arith.constant 0 : i32
    %c0_i32_0 = arith.constant 0 : i32
    %c0_i32_1 = arith.constant 0 : i32
    return %c0_i32, %c0_i32_0 : i32, i32
  }
  func.func @transform_6(%arg0: i32) -> (i32, i32) {
    %c0_i32 = arith.constant 0 : i32
    %c0_i32_0 = arith.constant 0 : i32
    %c0_i32_1 = arith.constant 0 : i32
    return %c0_i32, %c0_i32_0 : i32, i32
  }
  func.func @transform_7(%arg0: i32) -> (i32, i32) {
    %c0_i32 = arith.constant 0 : i32
    %c0_i32_0 = arith.constant 0 : i32
    %c0_i32_1 = arith.constant 0 : i32
    return %c0_i32, %c0_i32_0 : i32, i32
  }
  func.func @transform_8(%arg0: i32) -> (i32, i32) {
    %c0_i32 = arith.constant 0 : i32
    %c0_i32_0 = arith.constant 0 : i32
    %c0_i32_1 = arith.constant 0 : i32
    return %c0_i32, %c0_i32_0 : i32, i32
  }
  func.func @transform_9(%arg0: i32) -> (i32, i32) {
    %c0_i32 = arith.constant 0 : i32
    %c0_i32_0 = arith.constant 0 : i32
    %c0_i32_1 = arith.constant 0 : i32
    return %c0_i32, %c0_i32_0 : i32, i32
  }
  func.func @transform_10(%arg0: i32) -> (i32, i32) {
    %c0_i32 = arith.constant 0 : i32
    %c0_i32_0 = arith.constant 0 : i32
    %c0_i32_1 = arith.constant 0 : i32
    return %c0_i32, %c0_i32_0 : i32, i32
  }
  func.func @transform_11(%arg0: i32) -> (i32, i32) {
    %c0_i32 = arith.constant 0 : i32
    %c0_i32_0 = arith.constant 0 : i32
    %c0_i32_1 = arith.constant 0 : i32
    return %c0_i32, %c0_i32_0 : i32, i32
  }
  func.func @transform_12(%arg0: i32) -> (i32, i32) {
    %c0_i32 = arith.constant 0 : i32
    %c0_i32_0 = arith.constant 0 : i32
    %c0_i32_1 = arith.constant 0 : i32
    return %c0_i32, %c0_i32_0 : i32, i32
  }
  func.func @transform_13(%arg0: i32) -> (i32, i32) {
    %c0_i32 = arith.constant 0 : i32
    %c0_i32_0 = arith.constant 0 : i32
    return %arg0, %c0_i32 : i32, i32
  }
}

</mosaic_0001>

<bundles_post_ra>
// kernel: net_forward.1
= control target key start
LH: loop header
LB: loop body
LE: loop exit
PB: predicated region body
PF: predicated region fallthrough
CT: control target
= control target key end

     0   :  { %s1426_s16 = smov 84   ;;  %s1427_s17 = smov 28   ;;  %s2487_s0 = inlined_call_operand.vmem [shape: f32[2,28,28], index: 0, kind: input, shape index: {}]   ;;  %s2488_s1 = inlined_call_operand.vmem [shape: f32[140,240], index: 1, kind: input, shape index: {}]   ;;  %s2489_s2 = inlined_call_operand.vmem [shape: f32[24,48], index: 2, kind: input, shape index: {}]   ;;  %s2490_s3 = inlined_call_operand.vmem [shape: f32[24,48], index: 3, kind: input, shape index: {}]   ;;  %s2491_s4 = inlined_call_operand.vmem [shape: f32[1,120], index: 4, kind: input, shape index: {}]   ;;  %s2492_s5 = inlined_call_operand.vmem [shape: f32[600,160], index: 5, kind: input, shape index: {}]   ;;  %s2493_s6 = inlined_call_operand.vmem [shape: f32[8,16], index: 6, kind: input, shape index: {}]   ;;  %s2494_s7 = inlined_call_operand.vmem [shape: f32[8,16], index: 7, kind: input, shape index: {}]   ;;  %s2495_s8 = inlined_call_operand.vmem [shape: f32[1,80], index: 8, kind: input, shape index: {}]   ;;  %s2496_s9 = inlined_call_operand.vmem [shape: f32[320,50], index: 9, kind: input, shape index: {}]   ;;  %s2497_s10 = inlined_call_operand.vmem [shape: f32[1,50], index: 10, kind: input, shape index: {}]   ;;  %s2498_s11 = inlined_call_operand.vmem [shape: f32[50,10], index: 11, kind: input, shape index: {}]   ;;  %s2499_s12 = inlined_call_operand.vmem [shape: f32[1,10], index: 12, kind: input, shape index: {}]   ;;  %s2500_s13 = inlined_call_operand.hbm [shape: f32[2,10], index: 13, kind: output, shape index: {}]  }
   0x1   :  { %v63_v0 = vld [vmem:[%s2487_s0 + $0x3] sm:$0xff]  ;;  %v64_v1 = vld [vmem:[%s2487_s0 + $0xb] sm:$0xff]  ;;  %s1428_s24 = smov 112  }
   0x2   :  { %v51_v2 = vld [vmem:[%s2487_s0 + $0x1] sm:$0xff]  ;;  %v1367_v3 = vpack.i.bf16 %v64_v1, %v63_v0  ;;  %v52_v4 = vld [vmem:[%s2487_s0 + $0x9] sm:$0xff]  ;;  %v53_v9 = vld [vmem:[%s2487_s0 + $0x11] sm:$0xff] }
   0x3   :  { %v1357_v5 = vpack.i.bf16 %v52_v4, %v51_v2  ;;  %v70_v6 = vld [vmem:[%s2487_s0 + $0xc] sm:$0xff]  ;;  %v57_v7 = vld [vmem:[%s2487_s0 + $0x2] sm:$0xff] }
   0x4   :  { %1368 = vrot.lane.b32.xlu1 %v1367_v3, %s1426_s16  ;;  %v58_v8 = vld [vmem:[%s2487_s0 + $0xa] sm:$0xff]  ;;  %155 = vrot.lane.b32.xlu2 %v70_v6, %s1428_s24  ;;  %v54_v10 = vld [vmem:[%s2487_s0 + $0x21] sm:$0xff] }
   0x5   :  { %1358 = vrot.lane.b32.xlu0 %v1357_v5, %s1427_s17  ;;  %v69_v11 = vld [vmem:[%s2487_s0 + $0x4] sm:$0xff]  ;;  %v1362_v12 = vpack.i.bf16 %v58_v8, %v57_v7 }
   0x6   :  { %18 = vsyncpa [#allocation3], 0  ;;  %v1372_v13 = vpack.i.bf16 %v54_v10, %v53_v9  ;;  %s1429_s14 = smov 56   ;;  %v59_v14 = vld [vmem:[%s2487_s0 + $0x12] sm:$0xff]  ;;  %v66_v16 = vld [vmem:[%s2487_s0 + $0x23] sm:$0xff]  ;;  %vm248_vm0 = vcmask 1043456  }
   0x7   :  { %v65_v15 = vld [vmem:[%s2487_s0 + $0x13] sm:$0xff]  ;;  %v60_v17 = vld [vmem:[%s2487_s0 + $0x22] sm:$0xff]  ;;  %v61_v40 = vld [vmem:[%s2487_s0 + $0x2a] sm:$0xff]  ;;  %vm235_vm1 = vcmask 97280   ;;  %vm171_vm2 = vcmask 228352   ;;  %vm178_vm3 = vcmask 457728  }
   0x8   :  { %v229_v18 = vld [vmem:[%s2488_s1 + $0xf0] sm:$0xff]  ;;  %v230_v19 = vld [vmem:[%s2488_s1 + $0xf8] sm:$0xff]  ;;  %v227_v20 = vld [vmem:[%s2488_s1 + $0xe0] sm:$0xff]  ;;  %v1382_v22 = vpack.i.bf16 %v66_v16, %v65_v15  ;;  %v1377_v25 = vpack.i.bf16 %v60_v17, %v59_v14  ;;  %vm185_vm4 = vcmask 687104   ;;  %vm192_vm5 = vcmask 916480   ;;  %s1436_s21 = smov 80  }
   0x9   :  { %255 = vmatpush.msra.mxu0 %v229_v18  ;;  %325 = vmatpush.msra.mxu2 %v230_v19  ;;  %v228_v21 = vld [vmem:[%s2488_s1 + $0xe8] sm:$0xff]  ;;  %v225_v23 = vld [vmem:[%s2488_s1 + $0xd0] sm:$0xff]  ;;  %v226_v24 = vld [vmem:[%s2488_s1 + $0xd8] sm:$0xff]  ;;  %vm398_vm6 = vcmask 392192   ;;  %vm548_vm7 = vcmask 64512   ;;  %vm571_vm8 = vcmask 1045504  }
   0xa   :  { %v223_v26 = vld [vmem:[%s2488_s1 + $0xc0] sm:$0xff]  ;;  %v71_v27 = vld [vmem:[%s2487_s0 + $0x14] sm:$0xff]  ;;  %v224_v28 = vld [vmem:[%s2488_s1 + $0xc8] sm:$0xff]  ;;  %vm594_vm9 = vcmask 1041408   ;;  %vm612_vm10 = vcmask 982016   ;;  %vm617_vm11 = vcmask 850944  }
   0xb   :  { %256 = vmatpush.msra.mxu0 %v227_v20  ;;  %326 = vmatpush.msra.mxu2 %v228_v21  ;;  %v221_v29 = vld [vmem:[%s2488_s1 + $0xb0] sm:$0xff]  ;;  %v222_v32 = vld [vmem:[%s2488_s1 + $0xb8] sm:$0xff]  ;;  %v219_v33 = vld [vmem:[%s2488_s1 + $0xa0] sm:$0xff]  ;;  %vm773_vm12 = vcmask 719872   ;;  %vm620_vm13 = vcmask 785408   ;;  %vm1009_vm14 = vcmask 130048  }
   0xc   :  { %153 = vrot.lane.b32.xlu1 %v69_v11, %s1428_s24  ;;  %1373 = vrot.lane.b32.xlu2 %v1372_v13, %s1427_s17  ;;  %v55_v30 = vld [vmem:[%s2487_s0 + $0x29] sm:$0xff]  ;;  %v56_v31 = vld [vmem:[%s2487_s0 + $0x31] sm:$0xff]  ;;  %vm1176_vm15 = vcmask 523264  }
   0xd   :  { %1363 = vrot.lane.b32.xlu0 %v1362_v12, %s1429_s14  ;;  %257 = vmatpush.msra.mxu0 %v225_v23  ;;  %v220_v34 = vld [vmem:[%s2488_s1 + $0xa8] sm:$0xff]  ;;  %v1387_v35 = vpack.i.bf16 %v56_v31, %v55_v30  ;;  %v217_v36 = vld [vmem:[%s2488_s1 + $0x90] sm:$0xff]  ;;  %v218_v37 = vld [vmem:[%s2488_s1 + $0x98] sm:$0xff] }
   0xe   :  { %327 = vmatpush.msra.mxu2 %v226_v24  ;;  %v72_v38 = vld [vmem:[%s2487_s0 + $0x24] sm:$0xff]  ;;  %v213_v42 = vld [vmem:[%s2488_s1 + $0x70] sm:$0xff]  ;;  %v214_v43 = vld [vmem:[%s2488_s1 + $0x78] sm:$0xff] }
   0xf   :  { %258 = vmatpush.msra.mxu0 %v223_v26  ;;  %v215_v39 = vld [vmem:[%s2488_s1 + $0x80] sm:$0xff]  ;;  %v216_v41 = vld [vmem:[%s2488_s1 + $0x88] sm:$0xff]  ;;  %v62_v46 = vld [vmem:[%s2487_s0 + $0x32] sm:$0xff] }
  0x10   :  { %328 = vmatpush.msra.mxu2 %v224_v28  ;;  %v73_v44 = vld [vmem:[%s2487_s0 + $0x2c] sm:$0xff]  ;;  %v74_v47 = vld [vmem:[%s2487_s0 + $0x34] sm:$0xff]  ;;  %v211_v49 = vld [vmem:[%s2488_s1 + $0x60] sm:$0xff] }
  0x11   :  { %259 = vmatpush.msra.mxu0 %v221_v29  ;;  %v67_v45 = vld [vmem:[%s2487_s0 + $0x2b] sm:$0xff]  ;;  %v68_v48 = vld [vmem:[%s2487_s0 + $0x33] sm:$0xff]  ;;  %v207_v53 = vld [vmem:[%s2488_s1 + $0x40] sm:$0xff] }
  0x12   :  { %329 = vmatpush.msra.mxu2 %v222_v32  ;;  %v212_v50 = vld [vmem:[%s2488_s1 + $0x68] sm:$0xff]  ;;  %v209_v51 = vld [vmem:[%s2488_s1 + $0x50] sm:$0xff]  ;;  %v210_v52 = vld [vmem:[%s2488_s1 + $0x58] sm:$0xff] }
  0x13   :  { %260 = vmatpush.msra.mxu0 %v219_v33  ;;  %v208_v54 = vld [vmem:[%s2488_s1 + $0x48] sm:$0xff]  ;;  %v233_v55 = vld [vmem:[%s2488_s1 + $0x110] sm:$0xf]  ;;  %v234_v56 = vld [vmem:[%s2488_s1 + $0x118] sm:$0xf] }
  0x14   :  { %1383 = vrot.lane.b32.xlu1 %v1382_v22, %s1426_s16  ;;  %157 = vrot.lane.b32.xlu2 %v71_v27, %s1428_s24  ;;  %v205_v57 = vld [vmem:[%s2488_s1 + $0x30] sm:$0xff]  ;;  %v206_v58 = vld [vmem:[%s2488_s1 + $0x38] sm:$0xff] }
  0x15   :  { %1378 = vrot.lane.b32.xlu0 %v1377_v25, %s1429_s14  ;;  %330 = vmatpush.msra.mxu2 %v220_v34  ;;  %v231_v59 = vld [vmem:[%s2488_s1 + $0x100] sm:$0xff]  ;;  %v232_v60 = vld [vmem:[%s2488_s1 + $0x108] sm:$0xff]  ;;  %v201_v63 = vld [vmem:[%s2488_s1 + $0x10] sm:$0xff] }
  0x16   :  { %261 = vmatpush.msra.mxu0 %v217_v36  ;;  %1308 = vmatpush.msk.msra.mxu1 %vm248_vm0, %v233_v55  ;;  %v203_v61 = vld [vmem:[%s2488_s1 + $0x20] sm:$0xff]  ;;  %v204_v62 = vld [vmem:[%s2488_s1 + $0x28] sm:$0xff]  ;;  %v202_v0 = vld [vmem:[%s2488_s1 + $0x18] sm:$0xff] }
  0x17   :  { %331 = vmatpush.msra.mxu2 %v218_v37  ;;  %1315 = vmatpush.msk.msra.mxu3 %vm248_vm0, %v234_v56  ;;  %v199_v1 = vld [vmem:[%s2488_s1] sm:$0xff]  ;;  %v200_v2 = vld [vmem:[%s2488_s1 + $0x8] sm:$0xff]  ;;  %v47_v24 = vld [vmem:[%s2487_s0 + $0x10] sm:$0xff] }
  0x18   :  { %262 = vmatpush.msra.mxu0 %v215_v39  ;;  %305 = vmatpush.msra.mxu1 %v231_v59  ;;  %v45_v7 = vld [vmem:[%s2487_s0] sm:$0xff]  ;;  %v46_v14 = vld [vmem:[%s2487_s0 + $0x8] sm:$0xff] }
  0x19   :  { %332 = vmatpush.msra.mxu2 %v216_v41  ;;  %375 = vmatpush.msra.mxu3 %v232_v60 }
  0x1a   :  { %263 = vmatpush.msra.mxu0 %v213_v42 }
  0x1b   :  { %333 = vmatpush.msra.mxu2 %v214_v43 }
  0x1c   :  { %1388 = vrot.lane.b32.xlu1 %v1387_v35, %s1427_s17  ;;  %113 = vrot.lane.b32.xlu2 %v61_v40, %s1429_s14  ;;  %v48_v35 = vld [vmem:[%s2487_s0 + $0x20] sm:$0xff]  ;;  %s1433_s17 = smov 96  }
  0x1d   :  { %159 = vrot.lane.b32.xlu0 %v72_v38, %s1428_s24  ;;  %264 = vmatpush.msra.mxu0 %v211_v49 }
  0x1e   :  { %334 = vmatpush.msra.mxu2 %v212_v50 }
  0x1f   :  { %265 = vmatpush.msra.mxu0 %v209_v51 }
  0x20   :  { %335 = vmatpush.msra.mxu2 %v210_v52 }
  0x21   :  { %266 = vmatpush.msra.mxu0 %v207_v53 }
  0x22   :  { %336 = vmatpush.msra.mxu2 %v208_v54  ;;  %v50_v54 = vld [vmem:[%s2487_s0 + $0x30] sm:$0xff] }
  0x23   :  { %267 = vmatpush.msra.mxu0 %v205_v57 }
  0x24   :  { %161 = vrot.lane.b32.xlu1 %v73_v44, %s1428_s24  ;;  %115 = vrot.lane.b32.xlu2 %v62_v46, %s1429_s14 }
  0x25   :  { %137 = vrot.lane.b32.xlu0 %v67_v45, %s1426_s16  ;;  %337 = vmatpush.msra.mxu2 %v206_v58  ;;  %v49_v45 = vld [vmem:[%s2487_s0 + $0x28] sm:$0xff] }
  0x26   :  { %268 = vmatpush.msra.mxu0 %v203_v61 }
  0x27   :  { %338 = vmatpush.msra.mxu2 %v204_v62 }
  0x28   :  { %269 = vmatpush.msra.mxu0 %v201_v63 }
  0x29   :  { %339 = vmatpush.msra.mxu2 %v202_v0 }
  0x2a   :  { %270 = vmatpush.msra.mxu0 %v199_v1 }
  0x2b   :  { %340 = vmatpush.msra.mxu2 %v200_v2 }
  0x2c   :  { %163 = vrot.lane.b32.xlu1 %v74_v47, %s1428_s24 }
  0x2d   :  { %139 = vrot.lane.b32.xlu0 %v68_v48, %s1426_s16  ;;  %s1430_s16 = smov 8  }
  0x5e   :  { %v156_v5 = vpop.permute.xlu2 %155 }
  0x66   :  { %v1374_v19 = vpop.permute.xlu2 %1373 }
  0x67   :  { %v1375_v23 = vunpack.i.l.bf16 %v1374_v19  ;;  %v1376_v34 = vunpack.i.h.bf16 %v1374_v19 }
  0x69   :  { %v174_v29 = vsel %vm171_vm2, %v47_v24, %v1375_v23  ;;  %v175_v40 = vsel %vm171_vm2, %v48_v35, %v1376_v34 }
  0x6e   :  { %v158_v32 = vpop.permute.xlu2 %157 }
  0x76   :  { %v1369_v3 = vpop.permute.xlu1 %1368  ;;  %v114_v46 = vpop.permute.xlu2 %113 }
  0x77   :  { %v1359_v4 = vpop.permute.xlu0 %1358  ;;  %v1370_v11 = vunpack.i.l.bf16 %v1369_v3  ;;  %v1371_v22 = vunpack.i.h.bf16 %v1369_v3 }
  0x78   :  { %v1360_v6 = vunpack.i.l.bf16 %v1359_v4  ;;  %v1361_v12 = vunpack.i.h.bf16 %v1359_v4 }
  0x7a   :  { %v172_v13 = vsel %vm171_vm2, %v45_v7, %v1360_v6  ;;  %v173_v20 = vsel %vm171_vm2, %v46_v14, %v1361_v12 }
  0x7e   :  { %v154_v8 = vpop.permute.xlu1 %153  ;;  %v116_v56 = vpop.permute.xlu2 %115 }
  0x7f   :  { %v1364_v9 = vpop.permute.xlu0 %1363  ;;  %1309 = vmatmul.msk.f32.vlgmr.msra.gmra.mxu1 %vm235_vm1, %v154_v8  ;;  %1316 = vmatmul.msk.f32.vlgmr.msra.gmra.mxu3 %vm235_vm1, %v154_v8 }
  0x80   :  { %v1365_v10 = vunpack.i.l.bf16 %v1364_v9  ;;  %v1366_v15 = vunpack.i.h.bf16 %v1364_v9 }
  0x82   :  { %v179_v16 = vsel %vm178_vm3, %v172_v13, %v1365_v10  ;;  %v180_v21 = vsel %vm178_vm3, %v173_v20, %v1366_v15 }
  0x83   :  { %v186_v17 = vsel %vm185_vm4, %v179_v16, %v1370_v11  ;;  %v187_v27 = vsel %vm185_vm4, %v180_v21, %v1371_v22 }
  0x84   :  { %v193_v18 = vsel %vm192_vm5, %v186_v17, %v154_v8  ;;  %v194_v30 = vsel %vm192_vm5, %v187_v27, %v156_v5 }
  0x85   :  { %271 = vmatmul.f32.vlgmr.msra.gmra.mxu0 %v193_v18  ;;  %341 = vmatmul.f32.vlgmr.msra.gmra.mxu2 %v193_v18 }
  0x86   :  { %v1384_v26 = vpop.permute.xlu1 %1383 }
  0x87   :  { %1310 = vmatmul.msk.f32.gmra.mxu1 %vm235_vm1, %v156_v5  ;;  %1317 = vmatmul.msk.f32.gmra.mxu3 %vm235_vm1, %v156_v5  ;;  %v1379_v25 = vpop.permute.xlu0 %1378  ;;  %v1385_v31 = vunpack.i.l.bf16 %v1384_v26  ;;  %v1386_v42 = vunpack.i.h.bf16 %v1384_v26 }
  0x88   :  { %v1380_v28 = vunpack.i.l.bf16 %v1379_v25  ;;  %v1381_v37 = vunpack.i.h.bf16 %v1379_v25 }
  0x8a   :  { %v181_v33 = vsel %vm178_vm3, %v174_v29, %v1380_v28  ;;  %v182_v43 = vsel %vm178_vm3, %v175_v40, %v1381_v37  ;;  %v396_v37 = vld [vmem:[%s2489_s2 + $0x8] sm:$0xff] }
  0x8b   :  { %v188_v36 = vsel %vm185_vm4, %v181_v33, %v1385_v31  ;;  %v189_v47 = vsel %vm185_vm4, %v182_v43, %v1386_v42  ;;  %v395_v33 = vld [vmem:[%s2489_s2] sm:$0xff]  ;;  %v461_v40 = vld [vmem:[%s2490_s3 + $0x8] sm:$0xff] }
  0x8c   :  { %v195_v41 = vsel %vm192_vm5, %v188_v36, %v158_v32 }
  0x8d   :  { %274 = vmatmul.f32.gmra.mxu0 %v194_v30  ;;  %344 = vmatmul.f32.gmra.mxu2 %v194_v30 }
  0x8e   :  { %v1389_v39 = vpop.permute.xlu1 %1388 }
  0x8f   :  { %1311 = vmatmul.msk.f32.gmra.mxu1 %vm235_vm1, %v158_v32  ;;  %1318 = vmatmul.msk.f32.gmra.mxu3 %vm235_vm1, %v158_v32  ;;  %v160_v38 = vpop.permute.xlu0 %159  ;;  %v1390_v44 = vunpack.i.l.bf16 %v1389_v39  ;;  %v1391_v53 = vunpack.i.h.bf16 %v1389_v39  ;;  %v460_v39 = vld [vmem:[%s2490_s3] sm:$0xff] }
  0x90   :  { %v196_v51 = vsel %vm192_vm5, %v189_v47, %v160_v38 }
  0x91   :  { %v176_v48 = vsel %vm171_vm2, %v49_v45, %v1390_v44  ;;  %v177_v57 = vsel %vm171_vm2, %v50_v54, %v1391_v53  ;;  %vm1251_vm2 = vcmask 408576  }
  0x92   :  { %v183_v52 = vsel %vm178_vm3, %v176_v48, %v114_v46  ;;  %v184_v59 = vsel %vm178_vm3, %v177_v57, %v116_v56  ;;  %vm1278_vm3 = vcmask 74752  }
  0x95   :  { %277 = vmatmul.f32.gmra.mxu0 %v195_v41  ;;  %347 = vmatmul.f32.gmra.mxu2 %v195_v41  ;;  %v462_v41 = vld [vmem:[%s2490_s3 + $0x10] sm:$0xff]  ;;  %s1435_s3 = smov 32  }
  0x96   :  { %v162_v50 = vpop.permute.xlu1 %161 }
  0x97   :  { %1312 = vmatmul.msk.f32.gmra.mxu1 %vm235_vm1, %v160_v38  ;;  %1319 = vmatmul.msk.f32.gmra.mxu3 %vm235_vm1, %v160_v38  ;;  %v138_v49 = vpop.permute.xlu0 %137  ;;  %v397_v38 = vld [vmem:[%s2489_s2 + $0x10] sm:$0xff] }
  0x98   :  { %v190_v55 = vsel %vm185_vm4, %v183_v52, %v138_v49 }
  0x99   :  { %v197_v58 = vsel %vm192_vm5, %v190_v55, %v162_v50 }
  0x9d   :  { %280 = vmatmul.f32.gmra.mxu0 %v196_v51  ;;  %350 = vmatmul.f32.gmra.mxu2 %v196_v51 }
  0x9e   :  { %v164_v61 = vpop.permute.xlu1 %163 }
  0x9f   :  { %1313 = vmatmul.msk.f32.gmra.mxu1 %vm235_vm1, %v162_v50  ;;  %1320 = vmatmul.msk.f32.gmra.mxu3 %vm235_vm1, %v162_v50  ;;  %v140_v60 = vpop.permute.xlu0 %139 }
  0xa0   :  { %v191_v62 = vsel %vm185_vm4, %v184_v59, %v140_v60 }
  0xa1   :  { %v198_v63 = vsel %vm192_vm5, %v191_v62, %v164_v61  ;;  %v1797_v62 = vld [vmem:[%s2491_s4] ss:$0 sm:$0xff]  ;;  %s1432_s4 = smov 104  }
  0xa5   :  { %283 = vmatmul.f32.gmra.mxu0 %v197_v58  ;;  %353 = vmatmul.f32.gmra.mxu2 %v197_v58 }
  0xa7   :  { %1314 = vmatmul.msk.f32.gmra.mxu1 %vm235_vm1, %v164_v61  ;;  %1321 = vmatmul.msk.f32.gmra.mxu3 %vm235_vm1, %v164_v61  ;;  %vm1129_vm1 = vcmask 261120  }
  0xad   :  { %286 = vmatmul.f32.gmra.mxu0 %v198_v63  ;;  %356 = vmatmul.f32.gmra.mxu2 %v198_v63 }
  0xfc   :  { %v307_v0 = vpop.f32.mrf.mxu1 }
 0x102   :  { %v272_v1 = vpop.f32.mrf.mxu0  ;;  %v377_v2 = vpop.f32.mrf.mxu3 }
 0x103   :  { %v308_v31 = vadd.f32 %v307_v0, %v272_v1 }
 0x104   :  { %v310_v3 = vpop.f32.mrf.mxu1 }
 0x108   :  { %v342_v4 = vpop.f32.mrf.mxu2 }
 0x109   :  { %v378_v36 = vadd.f32 %v377_v2, %v342_v4 }
 0x10a   :  { %v275_v5 = vpop.f32.mrf.mxu0  ;;  %v380_v6 = vpop.f32.mrf.mxu3 }
 0x10b   :  { %v311_v29 = vadd.f32 %v310_v3, %v275_v5 }
 0x10c   :  { %v313_v7 = vpop.f32.mrf.mxu1 }
 0x110   :  { %v345_v8 = vpop.f32.mrf.mxu2 }
 0x111   :  { %v381_v35 = vadd.f32 %v380_v6, %v345_v8  ;;  %v653_v8 = vld [vmem:[%s2492_s5 + $0xf0] sm:$0xff] }
 0x112   :  { %v278_v9 = vpop.f32.mrf.mxu0  ;;  %v383_v10 = vpop.f32.mrf.mxu3  ;;  %778 = vmatpush.msrb.mxu0 %v653_v8  ;;  %v745_v8 = vld [vmem:[%s2492_s5 + $0x3d0] sm:$0xff] }
 0x113   :  { %v314_v27 = vadd.f32 %v313_v7, %v278_v9  ;;  %v651_v9 = vld [vmem:[%s2492_s5 + $0xe0] sm:$0xff] }
 0x114   :  { %v316_v11 = vpop.f32.mrf.mxu1  ;;  %779 = vmatpush.msrb.mxu0 %v651_v9  ;;  %v697_v9 = vld [vmem:[%s2492_s5 + $0x250] sm:$0xff] }
 0x118   :  { %v348_v12 = vpop.f32.mrf.mxu2 }
 0x119   :  { %v384_v34 = vadd.f32 %v383_v10, %v348_v12  ;;  %v685_v12 = vld [vmem:[%s2492_s5 + $0x1f0] sm:$0xff] }
 0x11a   :  { %v281_v13 = vpop.f32.mrf.mxu0  ;;  %v386_v14 = vpop.f32.mrf.mxu3  ;;  %801 = vmatpush.msrb.mxu2 %v685_v12  ;;  %v743_v12 = vld [vmem:[%s2492_s5 + $0x3c0] sm:$0xff] }
 0x11b   :  { %v317_v25 = vadd.f32 %v316_v11, %v281_v13  ;;  %v649_v11 = vld [vmem:[%s2492_s5 + $0xd0] sm:$0xff]  ;;  %v683_v13 = vld [vmem:[%s2492_s5 + $0x1e0] sm:$0xff] }
 0x11c   :  { %v319_v15 = vpop.f32.mrf.mxu1  ;;  %780 = vmatpush.msrb.mxu0 %v649_v11  ;;  %802 = vmatpush.msrb.mxu2 %v683_v13  ;;  %v659_v11 = vld [vmem:[%s2492_s5 + $0x120] sm:$0xff] }
 0x11d   :  { %v695_v13 = vld [vmem:[%s2492_s5 + $0x240] sm:$0xff] }
 0x120   :  { %v351_v16 = vpop.f32.mrf.mxu2 }
 0x121   :  { %v387_v32 = vadd.f32 %v386_v14, %v351_v16 }
 0x122   :  { %v284_v17 = vpop.f32.mrf.mxu0  ;;  %v389_v18 = vpop.f32.mrf.mxu3 }
 0x123   :  { %v320_v23 = vadd.f32 %v319_v15, %v284_v17 }
 0x124   :  { %v322_v20 = vpop.f32.mrf.mxu1 }
 0x128   :  { %v354_v19 = vpop.f32.mrf.mxu2 }
 0x129   :  { %v390_v30 = vadd.f32 %v389_v18, %v354_v19  ;;  %v717_v18 = vld [vmem:[%s2492_s5 + $0x2f0] sm:$0xff]  ;;  %v647_v19 = vld [vmem:[%s2492_s5 + $0xc0] sm:$0xff] }
 0x12a   :  { %v287_v21 = vpop.f32.mrf.mxu0  ;;  %v392_v24 = vpop.f32.mrf.mxu3  ;;  %781 = vmatpush.msrb.mxu0 %v647_v19  ;;  %v655_v19 = vld [vmem:[%s2492_s5 + $0x100] sm:$0xff] }
 0x12b   :  { %v323_v22 = vadd.f32 %v322_v20, %v287_v21  ;;  %v681_v20 = vld [vmem:[%s2492_s5 + $0x1d0] sm:$0xff] }
 0x12c   :  { %803 = vmatpush.msrb.mxu2 %v681_v20  ;;  %v739_v20 = vld [vmem:[%s2492_s5 + $0x3a0] sm:$0xff] }
 0x12d   :  { %418 = vmatpush.msrb.mxu1 %v323_v22 }
 0x12f   :  { %419 = vmatpush.msrb.mxu1 %v320_v23 }
 0x130   :  { %v357_v26 = vpop.f32.mrf.mxu2 }
 0x131   :  { %v393_v28 = vadd.f32 %v392_v24, %v357_v26  ;;  %420 = vmatpush.msrb.mxu1 %v317_v25  ;;  %v645_v24 = vld [vmem:[%s2492_s5 + $0xb0] sm:$0xff] }
 0x132   :  { %v713_v26 = vld [vmem:[%s2492_s5 + $0x2d0] sm:$0xff]  ;;  %782 = vmatpush.msrb.mxu0 %v645_v24  ;;  %v652_v24 = vld [vmem:[%s2492_s5 + $0xe8] sm:$0xff] }
 0x133   :  { %421 = vmatpush.msrb.mxu1 %v314_v27  ;;  %444 = vmatpush.msrb.mxu3 %v393_v28 }
 0x135   :  { %422 = vmatpush.msrb.mxu1 %v311_v29  ;;  %445 = vmatpush.msrb.mxu3 %v390_v30 }
 0x137   :  { %423 = vmatpush.msrb.mxu1 %v308_v31  ;;  %446 = vmatpush.msrb.mxu3 %v387_v32 }
 0x138   :  { %1322 = vmatmul.msk.f32.vlgmr.msrb.gmra.mxu1 %vm398_vm6, %v395_v33 }
 0x139   :  { %482 = vmatpush.msra.mxu1 %v323_v22  ;;  %447 = vmatpush.msrb.mxu3 %v384_v34 }
 0x13b   :  { %483 = vmatpush.msra.mxu1 %v320_v23  ;;  %448 = vmatpush.msrb.mxu3 %v381_v35  ;;  %v715_v23 = vld [vmem:[%s2492_s5 + $0x2e0] sm:$0xff] }
 0x13d   :  { %484 = vmatpush.msra.mxu1 %v317_v25  ;;  %449 = vmatpush.msrb.mxu3 %v378_v36  ;;  %v679_v25 = vld [vmem:[%s2492_s5 + $0x1c0] sm:$0xff] }
 0x13e   :  { %1325 = vmatmul.msk.f32.vlgmr.msrb.gmra.mxu3 %vm398_vm6, %v395_v33  ;;  %804 = vmatpush.msrb.mxu2 %v679_v25  ;;  %v689_v25 = vld [vmem:[%s2492_s5 + $0x210] sm:$0xff] }
 0x13f   :  { %485 = vmatpush.msra.mxu1 %v314_v27  ;;  %508 = vmatpush.msra.mxu3 %v393_v28  ;;  %v643_v27 = vld [vmem:[%s2492_s5 + $0xa0] sm:$0xff]  ;;  %v677_v28 = vld [vmem:[%s2492_s5 + $0x1b0] sm:$0xff] }
 0x140   :  { %1323 = vmatmul.msk.f32.gmra.mxu1 %vm398_vm6, %v396_v37  ;;  %783 = vmatpush.msrb.mxu0 %v643_v27  ;;  %v735_v27 = vld [vmem:[%s2492_s5 + $0x380] sm:$0xff] }
 0x141   :  { %486 = vmatpush.msra.mxu1 %v311_v29  ;;  %509 = vmatpush.msra.mxu3 %v390_v30  ;;  %v711_v30 = vld [vmem:[%s2492_s5 + $0x2c0] sm:$0xff] }
 0x142   :  { %805 = vmatpush.msrb.mxu2 %v677_v28  ;;  %v767_v28 = vld [vmem:[%s2492_s5 + $0x480] sm:$0xff] }
 0x143   :  { %487 = vmatpush.msra.mxu1 %v308_v31  ;;  %510 = vmatpush.msra.mxu3 %v387_v32  ;;  %v641_v31 = vld [vmem:[%s2492_s5 + $0x90] sm:$0xff]  ;;  %v675_v32 = vld [vmem:[%s2492_s5 + $0x1a0] sm:$0xff] }
 0x144   :  { %784 = vmatpush.msrb.mxu0 %v641_v31  ;;  %806 = vmatpush.msrb.mxu2 %v675_v32  ;;  %v733_v31 = vld [vmem:[%s2492_s5 + $0x370] sm:$0xff] }
 0x145   :  { %511 = vmatpush.msra.mxu3 %v384_v34  ;;  %824 = vmatpush.msrb.mxu1 %v717_v18  ;;  %v693_v18 = vld [vmem:[%s2492_s5 + $0x230] sm:$0xff] }
 0x146   :  { %1326 = vmatmul.msk.f32.gmra.mxu3 %vm398_vm6, %v396_v37  ;;  %v765_v32 = vld [vmem:[%s2492_s5 + $0x470] sm:$0xff] }
 0x147   :  { %512 = vmatpush.msra.mxu3 %v381_v35  ;;  %825 = vmatpush.msrb.mxu1 %v715_v23  ;;  %v737_v23 = vld [vmem:[%s2492_s5 + $0x390] sm:$0xff] }
 0x148   :  { %1324 = vmatmul.msk.f32.gmra.mxu1 %vm398_vm6, %v397_v38 }
 0x149   :  { %513 = vmatpush.msra.mxu3 %v378_v36  ;;  %826 = vmatpush.msrb.mxu1 %v713_v26  ;;  %v709_v36 = vld [vmem:[%s2492_s5 + $0x2b0] sm:$0xff]  ;;  %v687_v26 = vld [vmem:[%s2492_s5 + $0x200] sm:$0xff] }
 0x14b   :  { %827 = vmatpush.msrb.mxu1 %v711_v30  ;;  %v718_v30 = vld [vmem:[%s2492_s5 + $0x2f8] sm:$0xff] }
 0x14d   :  { %828 = vmatpush.msrb.mxu1 %v709_v36  ;;  %v763_v36 = vld [vmem:[%s2492_s5 + $0x460] sm:$0xff] }
 0x14e   :  { %1327 = vmatmul.msk.f32.gmra.mxu3 %vm398_vm6, %v397_v38  ;;  %v639_v38 = vld [vmem:[%s2492_s5 + $0x80] sm:$0xff] }
 0x14f   :  { %785 = vmatpush.msrb.mxu0 %v639_v38  ;;  %v761_v38 = vld [vmem:[%s2492_s5 + $0x450] sm:$0xff] }
 0x150   :  { %1328 = vmatmul.msk.f32.vlgmr.msra.gmra.mxu1 %vm398_vm6, %v460_v39 }
 0x156   :  { %1331 = vmatmul.msk.f32.vlgmr.msra.gmra.mxu3 %vm398_vm6, %v460_v39  ;;  %v673_v39 = vld [vmem:[%s2492_s5 + $0x190] sm:$0xff] }
 0x157   :  { %807 = vmatpush.msrb.mxu2 %v673_v39  ;;  %v714_v39 = vld [vmem:[%s2492_s5 + $0x2d8] sm:$0xff] }
 0x158   :  { %1329 = vmatmul.msk.f32.gmra.mxu1 %vm398_vm6, %v461_v40 }
 0x15e   :  { %1332 = vmatmul.msk.f32.gmra.mxu3 %vm398_vm6, %v461_v40 }
 0x160   :  { %1330 = vmatmul.msk.f32.gmra.mxu1 %vm398_vm6, %v462_v41 }
 0x166   :  { %1333 = vmatmul.msk.f32.gmra.mxu3 %vm398_vm6, %v462_v41 }
 0x1b5   :  { %v425_v42 = vpop.f32.mrf.mxu1 }
 0x1bd   :  { %v428_v43 = vpop.f32.mrf.mxu1 }
 0x1c1   :  { %v451_v44 = vpop.f32.mrf.mxu3 }
 0x1c5   :  { %v431_v45 = vpop.f32.mrf.mxu1 }
 0x1c9   :  { %v454_v46 = vpop.f32.mrf.mxu3 }
 0x1cd   :  { %v489_v47 = vpop.f32.mrf.mxu1 }
 0x1ce   :  { %v524_v48 = vmax.f32 %v425_v42, %v489_v47  ;;  %v707_v42 = vld [vmem:[%s2492_s5 + $0x2a0] sm:$0xff] }
 0x1cf   :  { %v635_v47 = vld [vmem:[%s2492_s5 + $0x60] sm:$0xff]  ;;  %829 = vmatpush.msrb.mxu1 %v707_v42  ;;  %v712_v42 = vld [vmem:[%s2492_s5 + $0x2c8] sm:$0xff] }
 0x1d0   :  { %536 = vrot.lane.b32.xlu2 %v524_v48, %s1430_s16 }
 0x1d1   :  { %v457_v49 = vpop.f32.mrf.mxu3 }
 0x1d5   :  { %v492_v50 = vpop.f32.mrf.mxu1 }
 0x1d6   :  { %v526_v51 = vmax.f32 %v428_v43, %v492_v50  ;;  %v637_v43 = vld [vmem:[%s2492_s5 + $0x70] sm:$0xff] }
 0x1d7   :  { %786 = vmatpush.msrb.mxu0 %v637_v43  ;;  %v633_v50 = vld [vmem:[%s2492_s5 + $0x50] sm:$0xff]  ;;  %v727_v43 = vld [vmem:[%s2492_s5 + $0x340] sm:$0xff] }
 0x1d8   :  { %540 = vrot.lane.b32.xlu1 %v526_v51, %s1430_s16 }
 0x1d9   :  { %v515_v52 = vpop.f32.mrf.mxu3  ;;  %787 = vmatpush.msrb.mxu0 %v635_v47  ;;  %v725_v47 = vld [vmem:[%s2492_s5 + $0x330] sm:$0xff] }
 0x1da   :  { %v525_v53 = vmax.f32 %v451_v44, %v515_v52  ;;  %v671_v44 = vld [vmem:[%s2492_s5 + $0x180] sm:$0xff] }
 0x1db   :  { %808 = vmatpush.msrb.mxu2 %v671_v44  ;;  %788 = vmatpush.msrb.mxu0 %v633_v50  ;;  %v759_v44 = vld [vmem:[%s2492_s5 + $0x440] sm:$0xff]  ;;  %v708_v50 = vld [vmem:[%s2492_s5 + $0x2a8] sm:$0xff] }
 0x1dc   :  { %538 = vrot.lane.b32.xlu0 %v525_v53, %s1430_s16  ;;  %v631_v53 = vld [vmem:[%s2492_s5 + $0x40] sm:$0xff] }
 0x1dd   :  { %v495_v54 = vpop.f32.mrf.mxu1  ;;  %789 = vmatpush.msrb.mxu0 %v631_v53  ;;  %v638_v53 = vld [vmem:[%s2492_s5 + $0x78] sm:$0xff] }
 0x1de   :  { %v1791_v57 = vmax.f32 %v431_v45, %v495_v54 }
 0x1e1   :  { %v518_v55 = vpop.f32.mrf.mxu3 }
 0x1e2   :  { %v527_v56 = vmax.f32 %v454_v46, %v518_v55  ;;  %v705_v46 = vld [vmem:[%s2492_s5 + $0x290] sm:$0xff] }
 0x1e3   :  { %830 = vmatpush.msrb.mxu1 %v705_v46  ;;  %v710_v46 = vld [vmem:[%s2492_s5 + $0x2b8] sm:$0xff] }
 0x1e4   :  { %542 = vrot.lane.b32.xlu2 %v527_v56, %s1430_s16  ;;  %544 = vrot.lane.b32.xlu0 %v1791_v57, %s1430_s16  ;;  %v629_v56 = vld [vmem:[%s2492_s5 + $0x30] sm:$0xff] }
 0x1e5   :  { %790 = vmatpush.msrb.mxu0 %v629_v56  ;;  %v753_v56 = vld [vmem:[%s2492_s5 + $0x410] sm:$0xff] }
 0x1e9   :  { %v521_v58 = vpop.f32.mrf.mxu3 }
 0x1ea   :  { %v529_v59 = vmax.f32 %v457_v49, %v521_v58 }
 0x1ec   :  { %546 = vrot.lane.b32.xlu1 %v529_v59, %s1430_s16  ;;  %s1431_s16 = smov 120   ;;  %v625_v59 = vld [vmem:[%s2492_s5 + $0x10] sm:$0xff] }
 0x22a   :  { %v537_v60 = vpop.permute.xlu2 %536 }
 0x23e   :  { %v543_v61 = vpop.permute.xlu2 %542 }
 0x24a   :  { %v541_v63 = vpop.permute.xlu1 %540 }
 0x24b   :  { %v550_v0 = vsel %vm548_vm7, %v541_v63, %v543_v61  ;;  %v623_v61 = vld [vmem:[%s2492_s5] sm:$0xff] }
 0x24c   :  { %v556_v1 = vmax.f32 %v526_v51, %v550_v0  ;;  %v703_v63 = vld [vmem:[%s2492_s5 + $0x280] sm:$0xff]  ;;  %v665_v0 = vld [vmem:[%s2492_s5 + $0x150] sm:$0xff] }
 0x24d   :  { %831 = vmatpush.msrb.mxu1 %v703_v63  ;;  %v686_v63 = vld [vmem:[%s2492_s5 + $0x1f8] sm:$0xff] }
 0x24e   :  { %v563_v2 = vadd.f32 %v1797_v62, %v556_v1  ;;  %v539_v3 = vpop.permute.xlu0 %538  ;;  %v701_v1 = vld [vmem:[%s2492_s5 + $0x270] sm:$0xff] }
 0x24f   :  { %v549_v4 = vsel %vm548_vm7, %v537_v60, %v539_v3  ;;  %v663_v3 = vld [vmem:[%s2492_s5 + $0x140] sm:$0xff]  ;;  %832 = vmatpush.msrb.mxu1 %v701_v1  ;;  %v750_v1 = vld [vmem:[%s2492_s5 + $0x3f8] sm:$0xff] }
 0x250   :  { %v555_v5 = vmax.f32 %v524_v48, %v549_v4  ;;  %v1802_v6 = vmax.f32 %v563_v2, 0.0  ;;  %v669_v48 = vld [vmem:[%s2492_s5 + $0x170] sm:$0xff]  ;;  %v699_v4 = vld [vmem:[%s2492_s5 + $0x260] sm:$0xff] }
 0x251   :  { %809 = vmatpush.msrb.mxu2 %v669_v48  ;;  %v749_v2 = vld [vmem:[%s2492_s5 + $0x3f0] sm:$0xff]  ;;  %833 = vmatpush.msrb.mxu1 %v699_v4  ;;  %v700_v4 = vld [vmem:[%s2492_s5 + $0x268] sm:$0xff] }
 0x252   :  { %v562_v7 = vadd.f32 %v1797_v62, %v555_v5  ;;  %v573_v15 = vrot.slane %v1802_v6, 2  ;;  %v584_v17 = vrot.slane %v1802_v6, 4  ;;  %v596_v35 = vrot.slane %v1802_v6, 6  ;;  %847 = vmatpush.msrb.mxu3 %v749_v2  ;;  %v747_v5 = vld [vmem:[%s2492_s5 + $0x3e0] sm:$0xff]  ;;  %v757_v48 = vld [vmem:[%s2492_s5 + $0x430] sm:$0xff]  ;;  %v632_v2 = vld [vmem:[%s2492_s5 + $0x48] sm:$0xff] }
 0x253   :  { %834 = vmatpush.msrb.mxu1 %v697_v9  ;;  %v698_v9 = vld [vmem:[%s2492_s5 + $0x258] sm:$0xff] }
 0x254   :  { %v1811_v10 = vmax.f32 %v562_v7, 0.0  ;;  %v661_v7 = vld [vmem:[%s2492_s5 + $0x130] sm:$0xff]  ;;  %848 = vmatpush.msrb.mxu3 %v747_v5  ;;  %v748_v5 = vld [vmem:[%s2492_s5 + $0x3e8] sm:$0xff] }
 0x255   :  { %835 = vmatpush.msrb.mxu1 %v695_v13  ;;  %v680_v13 = vld [vmem:[%s2492_s5 + $0x1c8] sm:$0xff] }
 0x256   :  { %v572_v14 = vrot.slane %v1811_v10, 2  ;;  %v583_v16 = vrot.slane %v1811_v10, 4  ;;  %v595_v29 = vrot.slane %v1811_v10, 6  ;;  %v545_v34 = vpop.permute.xlu0 %544  ;;  %849 = vmatpush.msrb.mxu3 %v745_v8  ;;  %v682_v8 = vld [vmem:[%s2492_s5 + $0x1d8] sm:$0xff] }
 0x257   :  { %836 = vmatpush.msrb.mxu1 %v693_v18  ;;  %v694_v18 = vld [vmem:[%s2492_s5 + $0x238] sm:$0xff] }
 0x258   :  { %v574_v21 = vsel %vm571_vm8, %v572_v14, %v573_v15  ;;  %v585_v22 = vsel %vm248_vm0, %v583_v16, %v584_v17  ;;  %v597_v41 = vsel %vm594_vm9, %v595_v29, %v596_v35  ;;  %v657_v14 = vld [vmem:[%s2492_s5 + $0x110] sm:$0xff]  ;;  %850 = vmatpush.msrb.mxu3 %v743_v12  ;;  %v650_v29 = vld [vmem:[%s2492_s5 + $0xd8] sm:$0xff]  ;;  %v628_v12 = vld [vmem:[%s2492_s5 + $0x28] sm:$0xff] }
 0x259   :  { %577 = vrot.lane.b32.xlu2 %v574_v21, %s1431_s16  ;;  %588 = vrot.lane.b32.xlu0 %v585_v22, %s1428_s24  ;;  %v741_v16 = vld [vmem:[%s2492_s5 + $0x3b0] sm:$0xff]  ;;  %v654_v21 = vld [vmem:[%s2492_s5 + $0xf8] sm:$0xff] }
 0x25a   :  { %851 = vmatpush.msrb.mxu3 %v741_v16  ;;  %v691_v22 = vld [vmem:[%s2492_s5 + $0x220] sm:$0xff]  ;;  %v626_v16 = vld [vmem:[%s2492_s5 + $0x18] sm:$0xff] }
 0x25b   :  { %837 = vmatpush.msrb.mxu1 %v691_v22  ;;  %v692_v22 = vld [vmem:[%s2492_s5 + $0x228] sm:$0xff] }
 0x25c   :  { %852 = vmatpush.msrb.mxu3 %v739_v20  ;;  %v624_v20 = vld [vmem:[%s2492_s5 + $0x8] sm:$0xff] }
 0x25d   :  { %838 = vmatpush.msrb.mxu1 %v689_v25  ;;  %v690_v25 = vld [vmem:[%s2492_s5 + $0x218] sm:$0xff] }
 0x25e   :  { %v547_v33 = vpop.permute.xlu1 %546  ;;  %853 = vmatpush.msrb.mxu3 %v737_v23  ;;  %v740_v23 = vld [vmem:[%s2492_s5 + $0x3a8] sm:$0xff] }
 0x25f   :  { %v551_v37 = vsel %vm548_vm7, %v545_v34, %v547_v33  ;;  %v648_v33 = vld [vmem:[%s2492_s5 + $0xc8] sm:$0xff]  ;;  %839 = vmatpush.msrb.mxu1 %v687_v26  ;;  %v738_v26 = vld [vmem:[%s2492_s5 + $0x398] sm:$0xff] }
 0x260   :  { %v557_v40 = vmax.f32 %v1791_v57, %v551_v37  ;;  %v627_v57 = vld [vmem:[%s2492_s5 + $0x20] sm:$0xff]  ;;  %854 = vmatpush.msrb.mxu3 %v735_v27  ;;  %v716_v34 = vld [vmem:[%s2492_s5 + $0x2e8] sm:$0xff]  ;;  %v646_v37 = vld [vmem:[%s2492_s5 + $0xb8] sm:$0xff] }
 0x261   :  { %600 = vrot.lane.b32.xlu0 %v597_v41, %s1432_s4  ;;  %791 = vmatpush.msrb.mxu0 %v627_v57  ;;  %v644_v41 = vld [vmem:[%s2492_s5 + $0xa8] sm:$0xff] }
 0x262   :  { %v564_v45 = vadd.f32 %v1797_v62, %v557_v40  ;;  %v667_v62 = vld [vmem:[%s2492_s5 + $0x160] sm:$0xff]  ;;  %939 = vmatpush.msra.mxu1 %v718_v30  ;;  %855 = vmatpush.msrb.mxu3 %v733_v31  ;;  %v729_v40 = vld [vmem:[%s2492_s5 + $0x350] sm:$0xff]  ;;  %v636_v57 = vld [vmem:[%s2492_s5 + $0x68] sm:$0xff] }
 0x263   :  { %792 = vmatpush.msrb.mxu0 %v625_v59  ;;  %810 = vmatpush.msrb.mxu2 %v667_v62  ;;  %v751_v62 = vld [vmem:[%s2492_s5 + $0x400] sm:$0xff]  ;;  %v672_v27 = vld [vmem:[%s2492_s5 + $0x188] sm:$0xff]  ;;  %v670_v30 = vld [vmem:[%s2492_s5 + $0x178] sm:$0xff] }
 0x264   :  { %v567_v49 = vmax.f32 %v564_v45, 0.0  ;;  %940 = vmatpush.msra.mxu1 %v716_v34  ;;  %v642_v45 = vld [vmem:[%s2492_s5 + $0x98] sm:$0xff] }
 0x265   :  { %793 = vmatpush.msrb.mxu0 %v623_v61  ;;  %811 = vmatpush.msrb.mxu2 %v665_v0  ;;  %v719_v61 = vld [vmem:[%s2492_s5 + $0x300] sm:$0xff]  ;;  %v702_v0 = vld [vmem:[%s2492_s5 + $0x278] sm:$0xff] }
 0x266   :  { %v586_v51 = vrot.slane %v567_v49, 4  ;;  %v575_v52 = vrot.slane %v567_v49, 2  ;;  %v598_v58 = vrot.slane %v567_v49, 6  ;;  %941 = vmatpush.msra.mxu1 %v714_v39  ;;  %v734_v31 = vld [vmem:[%s2492_s5 + $0x378] sm:$0xff] }
 0x267   :  { %812 = vmatpush.msrb.mxu2 %v663_v3  ;;  %v684_v3 = vld [vmem:[%s2492_s5 + $0x1e8] sm:$0xff]  ;;  %v666_v34 = vld [vmem:[%s2492_s5 + $0x158] sm:$0xff] }
 0x268   :  { %v587_v54 = vsel %vm248_vm0, %v584_v17, %v586_v51  ;;  %v576_v55 = vsel %vm571_vm8, %v573_v15, %v575_v52  ;;  %v599_v60 = vsel %vm594_vm9, %v596_v35, %v598_v58  ;;  %v771_v15 = vld [vmem:[%s2492_s5 + $0x4a0] sm:$0xff]  ;;  %v769_v17 = vld [vmem:[%s2492_s5 + $0x490] sm:$0xff]  ;;  %942 = vmatpush.msra.mxu1 %v712_v42  ;;  %vm1127_vm0 = vcmask 654336  }
 0x269   :  { %608 = vrot.lane.b32.xlu0 %v567_v49, %s1433_s17  ;;  %590 = vrot.lane.b32.xlu2 %v587_v54, %s1428_s24  ;;  %v731_v35 = vld [vmem:[%s2492_s5 + $0x360] sm:$0xff]  ;;  %v640_v49 = vld [vmem:[%s2492_s5 + $0x88] sm:$0xff] }
 0x26a   :  { %579 = vrot.lane.b32.xlu1 %v576_v55, %s1431_s16  ;;  %813 = vmatpush.msrb.mxu2 %v661_v7  ;;  %v723_v51 = vld [vmem:[%s2492_s5 + $0x320] sm:$0xff]  ;;  %v706_v54 = vld [vmem:[%s2492_s5 + $0x298] sm:$0xff]  ;;  %v721_v55 = vld [vmem:[%s2492_s5 + $0x310] sm:$0xff] }
 0x26b   :  { %875 = vmatpush.msra.mxu0 %v771_v15  ;;  %856 = vmatpush.msrb.mxu3 %v731_v35  ;;  %v755_v52 = vld [vmem:[%s2492_s5 + $0x420] sm:$0xff]  ;;  %v630_v7 = vld [vmem:[%s2492_s5 + $0x38] sm:$0xff]  ;;  %v744_v15 = vld [vmem:[%s2492_s5 + $0x3c8] sm:$0xff] }
 0x26c   :  { %814 = vmatpush.msrb.mxu2 %v659_v11  ;;  %943 = vmatpush.msra.mxu1 %v710_v46  ;;  %v746_v11 = vld [vmem:[%s2492_s5 + $0x3d8] sm:$0xff]  ;;  %v660_v46 = vld [vmem:[%s2492_s5 + $0x128] sm:$0xff] }
 0x26d   :  { %876 = vmatpush.msra.mxu0 %v769_v17  ;;  %857 = vmatpush.msrb.mxu3 %v729_v40  ;;  %v678_v17 = vld [vmem:[%s2492_s5 + $0x1b8] sm:$0xff]  ;;  %v728_v40 = vld [vmem:[%s2492_s5 + $0x348] sm:$0xff] }
 0x26e   :  { %815 = vmatpush.msrb.mxu2 %v657_v14  ;;  %944 = vmatpush.msra.mxu1 %v708_v50  ;;  %v696_v14 = vld [vmem:[%s2492_s5 + $0x248] sm:$0xff]  ;;  %v730_v35 = vld [vmem:[%s2492_s5 + $0x358] sm:$0xff] }
 0x26f   :  { %877 = vmatpush.msra.mxu0 %v767_v28  ;;  %858 = vmatpush.msrb.mxu3 %v727_v43  ;;  %v688_v28 = vld [vmem:[%s2492_s5 + $0x208] sm:$0xff]  ;;  %v722_v50 = vld [vmem:[%s2492_s5 + $0x318] sm:$0xff] }
 0x270   :  { %816 = vmatpush.msrb.mxu2 %v655_v19  ;;  %945 = vmatpush.msra.mxu1 %v706_v54  ;;  %v742_v19 = vld [vmem:[%s2492_s5 + $0x3b8] sm:$0xff]  ;;  %v768_v43 = vld [vmem:[%s2492_s5 + $0x488] sm:$0xff] }
 0x271   :  { %602 = vrot.lane.b32.xlu2 %v599_v60, %s1432_s4  ;;  %878 = vmatpush.msra.mxu0 %v765_v32  ;;  %v704_v60 = vld [vmem:[%s2492_s5 + $0x288] sm:$0xff] }
 0x272   :  { %606 = vrot.lane.b32.xlu1 %v1802_v6, %s1433_s17  ;;  %893 = vmatpush.msra.mxu2 %v654_v21  ;;  %v676_v21 = vld [vmem:[%s2492_s5 + $0x1a8] sm:$0xff] }
 0x273   :  { %879 = vmatpush.msra.mxu0 %v763_v36  ;;  %859 = vmatpush.msrb.mxu3 %v725_v47  ;;  %v668_v32 = vld [vmem:[%s2492_s5 + $0x168] sm:$0xff] }
 0x274   :  { %894 = vmatpush.msra.mxu2 %v652_v24  ;;  %946 = vmatpush.msra.mxu1 %v704_v60  ;;  %v674_v24 = vld [vmem:[%s2492_s5 + $0x198] sm:$0xff]  ;;  %v724_v47 = vld [vmem:[%s2492_s5 + $0x328] sm:$0xff] }
 0x275   :  { %880 = vmatpush.msra.mxu0 %v761_v38  ;;  %860 = vmatpush.msrb.mxu3 %v723_v51  ;;  %v664_v38 = vld [vmem:[%s2492_s5 + $0x148] sm:$0xff]  ;;  %v758_v60 = vld [vmem:[%s2492_s5 + $0x438] sm:$0xff] }
 0x276   :  { %895 = vmatpush.msra.mxu2 %v650_v29  ;;  %947 = vmatpush.msra.mxu1 %v702_v0  ;;  %v736_v29 = vld [vmem:[%s2492_s5 + $0x388] sm:$0xff] }
 0x277   :  { %881 = vmatpush.msra.mxu0 %v759_v44  ;;  %861 = vmatpush.msrb.mxu3 %v721_v55  ;;  %v662_v44 = vld [vmem:[%s2492_s5 + $0x138] sm:$0xff]  ;;  %v720_v55 = vld [vmem:[%s2492_s5 + $0x308] sm:$0xff] }
 0x278   :  { %896 = vmatpush.msra.mxu2 %v648_v33  ;;  %948 = vmatpush.msra.mxu1 %v700_v4  ;;  %v732_v33 = vld [vmem:[%s2492_s5 + $0x368] sm:$0xff] }
 0x279   :  { %882 = vmatpush.msra.mxu0 %v757_v48  ;;  %862 = vmatpush.msrb.mxu3 %v719_v61  ;;  %v766_v48 = vld [vmem:[%s2492_s5 + $0x478] sm:$0xff] }
 0x27a   :  { %897 = vmatpush.msra.mxu2 %v646_v37  ;;  %949 = vmatpush.msra.mxu1 %v698_v9  ;;  %v772_v37 = vld [vmem:[%s2492_s5 + $0x4a8] sm:$0xff] }
 0x27b   :  { %883 = vmatpush.msra.mxu0 %v755_v52  ;;  %962 = vmatpush.msra.mxu3 %v750_v1  ;;  %v764_v52 = vld [vmem:[%s2492_s5 + $0x468] sm:$0xff]  ;;  %v754_v1 = vld [vmem:[%s2492_s5 + $0x418] sm:$0xff] }
 0x27c   :  { %898 = vmatpush.msra.mxu2 %v644_v41  ;;  %950 = vmatpush.msra.mxu1 %v696_v14  ;;  %v770_v41 = vld [vmem:[%s2492_s5 + $0x498] sm:$0xff] }
 0x27d   :  { %884 = vmatpush.msra.mxu0 %v753_v56  ;;  %963 = vmatpush.msra.mxu3 %v748_v5  ;;  %v762_v56 = vld [vmem:[%s2492_s5 + $0x458] sm:$0xff] }
 0x27e   :  { %899 = vmatpush.msra.mxu2 %v642_v45  ;;  %951 = vmatpush.msra.mxu1 %v694_v18  ;;  %v726_v45 = vld [vmem:[%s2492_s5 + $0x338] sm:$0xff] }
 0x27f   :  { %885 = vmatpush.msra.mxu0 %v751_v62  ;;  %964 = vmatpush.msra.mxu3 %v746_v11 }
 0x280   :  { %900 = vmatpush.msra.mxu2 %v640_v49  ;;  %952 = vmatpush.msra.mxu1 %v692_v22  ;;  %v658_v49 = vld [vmem:[%s2492_s5 + $0x118] sm:$0xff] }
 0x281   :  { %965 = vmatpush.msra.mxu3 %v744_v15 }
 0x282   :  { %901 = vmatpush.msra.mxu2 %v638_v53  ;;  %953 = vmatpush.msra.mxu1 %v690_v25  ;;  %v656_v53 = vld [vmem:[%s2492_s5 + $0x108] sm:$0xff] }
 0x283   :  { %966 = vmatpush.msra.mxu3 %v742_v19 }
 0x284   :  { %902 = vmatpush.msra.mxu2 %v636_v57  ;;  %954 = vmatpush.msra.mxu1 %v688_v28  ;;  %v760_v57 = vld [vmem:[%s2492_s5 + $0x448] sm:$0xff] }
 0x285   :  { %967 = vmatpush.msra.mxu3 %v740_v23 }
 0x287   :  { %968 = vmatpush.msra.mxu3 %v738_v26 }
 0x289   :  { %969 = vmatpush.msra.mxu3 %v736_v29  ;;  %v1008_v29 = vld [vmem:[%s2493_s6] sm:$0xff]  ;;  %s1434_s6 = smov 48  }
 0x28b   :  { %970 = vmatpush.msra.mxu3 %v734_v31 }
 0x28d   :  { %971 = vmatpush.msra.mxu3 %v732_v33 }
 0x28f   :  { %972 = vmatpush.msra.mxu3 %v730_v35 }
 0x291   :  { %973 = vmatpush.msra.mxu3 %v728_v40 }
 0x293   :  { %974 = vmatpush.msra.mxu3 %v726_v45 }
 0x295   :  { %975 = vmatpush.msra.mxu3 %v724_v47 }
 0x297   :  { %976 = vmatpush.msra.mxu3 %v722_v50 }
 0x299   :  { %977 = vmatpush.msra.mxu3 %v720_v55  ;;  %v1163_v55 = vld [vmem:[%s2496_s9 + $0xf8] sm:$0xff] }
 0x2b3   :  { %v2107_v58 = vpop.permute.xlu2 %577 }
 0x2b4   :  { %v2112_v59 = vsel %vm612_vm10, %v1811_v10, %v2107_v58  ;;  %v634_v10 = vld [vmem:[%s2492_s5 + $0x58] sm:$0xff] }
 0x2b5   :  { %794 = vmatmul.f32.vlgmr.msrb.gmra.mxu0 %v2112_v59  ;;  %903 = vmatpush.msra.mxu2 %v634_v10  ;;  %v756_v10 = vld [vmem:[%s2492_s5 + $0x428] sm:$0xff] }
 0x2b6   :  { %916 = vmatpush.msrb.mxu0 %v686_v63 }
 0x2b7   :  { %904 = vmatpush.msra.mxu2 %v632_v2  ;;  %v752_v2 = vld [vmem:[%s2492_s5 + $0x408] sm:$0xff] }
 0x2b8   :  { %917 = vmatpush.msrb.mxu0 %v684_v3 }
 0x2b9   :  { %905 = vmatpush.msra.mxu2 %v630_v7 }
 0x2ba   :  { %918 = vmatpush.msrb.mxu0 %v682_v8 }
 0x2bb   :  { %906 = vmatpush.msra.mxu2 %v628_v12 }
 0x2bc   :  { %919 = vmatpush.msrb.mxu0 %v680_v13 }
 0x2bd   :  { %907 = vmatpush.msra.mxu2 %v626_v16 }
 0x2be   :  { %920 = vmatpush.msrb.mxu0 %v678_v17 }
 0x2bf   :  { %908 = vmatpush.msra.mxu2 %v624_v20 }
 0x2c0   :  { %921 = vmatpush.msrb.mxu0 %v676_v21 }
 0x2c2   :  { %922 = vmatpush.msrb.mxu0 %v674_v24 }
 0x2c3   :  { %v591_v42 = vpop.permute.xlu2 %590 }
 0x2c4   :  { %923 = vmatpush.msrb.mxu0 %v672_v27 }
 0x2c6   :  { %924 = vmatpush.msrb.mxu0 %v670_v30  ;;  %v1053_v30 = vld [vmem:[%s2494_s7] sm:$0xff]  ;;  %s1299_s7 = sshll.u32 %s2500_s13, 4  ;;  %s1300_s7 = int_to_ptr.hbm [resolvable:$true] %s1299_s7 }
 0x2c8   :  { %925 = vmatpush.msrb.mxu0 %v668_v32 }
 0x2ca   :  { %926 = vmatpush.msrb.mxu0 %v666_v34 }
 0x2cb   :  { %v589_v36 = vpop.permute.xlu0 %588 }
 0x2cc   :  { %v2240_v39 = vsel %vm192_vm5, %v2107_v58, %v589_v36  ;;  %927 = vmatpush.msrb.mxu0 %v664_v38  ;;  %v603_v58 = vpop.permute.xlu2 %602 }
 0x2cd   :  { %817 = vmatmul.f32.vlgmr.msrb.gmra.mxu2 %v2240_v39  ;;  %v619_v62 = vsel %vm617_vm11, %v591_v42, %v603_v58 }
 0x2ce   :  { %990 = vmatpush.msrb.mxu2 %v772_v37  ;;  %928 = vmatpush.msrb.mxu0 %v662_v44 }
 0x2d0   :  { %991 = vmatpush.msrb.mxu2 %v770_v41  ;;  %929 = vmatpush.msrb.mxu0 %v660_v46 }
 0x2d2   :  { %992 = vmatpush.msrb.mxu2 %v768_v43  ;;  %930 = vmatpush.msrb.mxu0 %v658_v49 }
 0x2d3   :  { %v601_v51 = vpop.permute.xlu0 %600 }
 0x2d4   :  { %v618_v54 = vsel %vm617_vm11, %v589_v36, %v601_v51  ;;  %993 = vmatpush.msrb.mxu2 %v766_v48  ;;  %931 = vmatpush.msrb.mxu0 %v656_v53  ;;  %v1147_v53 = vld [vmem:[%s2496_s9 + $0x78] sm:$0xff] }
 0x2d5   :  { %840 = vmatmul.f32.vlgmr.msrb.gmra.mxu1 %v618_v54 }
 0x2d6   :  { %994 = vmatpush.msrb.mxu2 %v764_v52  ;;  %v1170_v52 = vld [vmem:[%s2496_s9 + $0x130] sm:$0xff] }
 0x2d8   :  { %995 = vmatpush.msrb.mxu2 %v762_v56  ;;  %v1146_v56 = vld [vmem:[%s2496_s9 + $0x70] sm:$0xff] }
 0x2da   :  { %996 = vmatpush.msrb.mxu2 %v760_v57  ;;  %v1162_v57 = vld [vmem:[%s2496_s9 + $0xf0] sm:$0xff] }
 0x2db   :  { %v609_v4 = vpop.permute.xlu0 %608 }
 0x2dc   :  { %v580_v61 = vpop.permute.xlu1 %579  ;;  %997 = vmatpush.msrb.mxu2 %v758_v60  ;;  %v622_v5 = vsel %vm620_vm13, %v603_v58, %v609_v4  ;;  %v1145_v58 = vld [vmem:[%s2496_s9 + $0x68] sm:$0xff]  ;;  %v1168_v60 = vld [vmem:[%s2496_s9 + $0x120] sm:$0xff] }
 0x2dd   :  { %v614_v63 = vsel %vm612_vm10, %v1802_v6, %v580_v61  ;;  %v616_v0 = vsel %vm192_vm5, %v580_v61, %v591_v42  ;;  %843 = vmatmul.f32.gmra.mxu1 %v619_v62  ;;  %v1161_v61 = vld [vmem:[%s2496_s9 + $0xe8] sm:$0xff] }
 0x2de   :  { %797 = vmatmul.f32.gmra.mxu0 %v614_v63  ;;  %820 = vmatmul.f32.gmra.mxu2 %v616_v0 }
 0x2df   :  { %998 = vmatpush.msrb.mxu2 %v756_v10  ;;  %v1166_v10 = vld [vmem:[%s2496_s9 + $0x110] sm:$0xff] }
 0x2e1   :  { %999 = vmatpush.msrb.mxu2 %v754_v1 }
 0x2e3   :  { %1000 = vmatpush.msrb.mxu2 %v752_v2 }
 0x2e4   :  { %v607_v3 = vpop.permute.xlu1 %606 }
 0x2e5   :  { %v621_v6 = vsel %vm620_vm13, %v601_v51, %v607_v3  ;;  %955 = vmatmul.f32.vlgmr.msra.gmra.mxu1 %v618_v54  ;;  %v1171_v51 = vld [vmem:[%s2496_s9 + $0x138] sm:$0xff]  ;;  %v1169_v54 = vld [vmem:[%s2496_s9 + $0x128] sm:$0xff] }
 0x2e6   :  { %863 = vmatmul.f32.vlgmr.msrb.gmra.mxu3 %v621_v6  ;;  %1334 = vmatmul.msk.f32.vlgmr.msra.gmra.mxu0 %vm773_vm12, %v607_v3 }
 0x2e7   :  { %909 = vmatmul.f32.vlgmr.msra.gmra.mxu2 %v2112_v59  ;;  %1179 = vmatpush.msra.mxu0 %v1147_v53 }
 0x2e9   :  { %1180 = vmatpush.msra.mxu0 %v1146_v56 }
 0x2eb   :  { %1181 = vmatpush.msra.mxu0 %v1145_v58  ;;  %v1395_v58 = vld [vmem:[%s2499_s12] ss:$0 sm:$0xff] }
 0x2ed   :  { %958 = vmatmul.f32.gmra.mxu1 %v619_v62  ;;  %v1167_v62 = vld [vmem:[%s2496_s9 + $0x118] sm:$0xff] }
 0x2ee   :  { %866 = vmatmul.f32.gmra.mxu3 %v622_v5  ;;  %1335 = vmatmul.msk.f32.gmra.mxu0 %vm773_vm12, %v609_v4 }
 0x2ef   :  { %912 = vmatmul.f32.gmra.mxu2 %v614_v63  ;;  %v1165_v63 = vld [vmem:[%s2496_s9 + $0x108] sm:$0xff] }
 0x2f6   :  { %932 = vmatmul.f32.vlgmr.msrb.gmra.mxu0 %v2240_v39  ;;  %978 = vmatmul.f32.vlgmr.msra.gmra.mxu3 %v621_v6 }
 0x2f7   :  { %1336 = vmatmul.msk.f32.vlgmr.msrb.gmra.mxu2 %vm773_vm12, %v607_v3  ;;  %v1393_v3 = vld [vmem:[%s2495_s8] ss:$0 sm:$0xff] }
 0x2fe   :  { %935 = vmatmul.f32.gmra.mxu0 %v616_v0  ;;  %981 = vmatmul.f32.gmra.mxu3 %v622_v5  ;;  %v1164_v0 = vld [vmem:[%s2496_s9 + $0x100] sm:$0xff] }
 0x2ff   :  { %1337 = vmatmul.msk.f32.gmra.mxu2 %vm773_vm12, %v609_v4 }
 0x332   :  { %v795_v7 = vpop.f32.mrf.mxu0 }
 0x350   :  { %v818_v8 = vpop.f32.mrf.mxu2 }
 0x351   :  { %v819_v17 = vadd.f32 %v818_v8, %v795_v7 }
 0x352   :  { %v841_v59 = vpop.f32.mrf.mxu1 }
 0x353   :  { %v842_v19 = vadd.f32 %v841_v59, %v819_v17  ;;  %v1141_v17 = vld [vmem:[%s2496_s9 + $0x48] sm:$0xff] }
 0x35a   :  { %v844_v15 = vpop.f32.mrf.mxu1 }
 0x35b   :  { %v798_v9 = vpop.f32.mrf.mxu0 }
 0x361   :  { %v821_v11 = vpop.f32.mrf.mxu2 }
 0x362   :  { %v822_v18 = vadd.f32 %v821_v11, %v798_v9  ;;  %v956_v27 = vpop.f32.mrf.mxu1  ;;  %v1144_v11 = vld [vmem:[%s2496_s9 + $0x60] sm:$0xff] }
 0x363   :  { %v887_v12 = vpop.f32.mrf.mxu0  ;;  %1182 = vmatpush.msra.mxu0 %v1144_v11 }
 0x364   :  { %v845_v20 = vadd.f32 %v844_v15, %v822_v18  ;;  %v1142_v15 = vld [vmem:[%s2496_s9 + $0x50] sm:$0xff]  ;;  %v1157_v18 = vld [vmem:[%s2496_s9 + $0xc8] sm:$0xff] }
 0x369   :  { %v864_v13 = vpop.f32.mrf.mxu3 }
 0x36a   :  { %v910_v14 = vpop.f32.mrf.mxu2  ;;  %v865_v22 = vadd.f32 %v864_v13, %v842_v19  ;;  %v959_v36 = vpop.f32.mrf.mxu1  ;;  %v1143_v13 = vld [vmem:[%s2496_s9 + $0x58] sm:$0xff]  ;;  %v1140_v19 = vld [vmem:[%s2496_s9 + $0x40] sm:$0xff] }
 0x36b   :  { %v890_v16 = vpop.f32.mrf.mxu0  ;;  %1183 = vmatpush.msra.mxu0 %v1143_v13 }
 0x36c   :  { %v888_v28 = vadd.f32 %v887_v12, %v865_v22  ;;  %v1160_v12 = vld [vmem:[%s2496_s9 + $0xe0] sm:$0xff]  ;;  %v1155_v22 = vld [vmem:[%s2496_s9 + $0xb8] sm:$0xff] }
 0x36d   :  { %1184 = vmatpush.msra.mxu0 %v1142_v15 }
 0x36f   :  { %1185 = vmatpush.msra.mxu0 %v1141_v17 }
 0x371   :  { %v867_v21 = vpop.f32.mrf.mxu3  ;;  %1186 = vmatpush.msra.mxu0 %v1140_v19 }
 0x372   :  { %v868_v23 = vadd.f32 %v867_v21, %v845_v20  ;;  %v913_v24 = vpop.f32.mrf.mxu2  ;;  %v1156_v20 = vld [vmem:[%s2496_s9 + $0xc0] sm:$0xff]  ;;  %v1139_v21 = vld [vmem:[%s2496_s9 + $0x38] sm:$0xff] }
 0x373   :  { %v933_v25 = vpop.f32.mrf.mxu0  ;;  %1187 = vmatpush.msra.mxu0 %v1139_v21 }
 0x374   :  { %v891_v26 = vadd.f32 %v890_v16, %v868_v23  ;;  %v934_v34 = vadd.f32 %v933_v25, %v910_v14  ;;  %v1159_v14 = vld [vmem:[%s2496_s9 + $0xd8] sm:$0xff]  ;;  %v1158_v16 = vld [vmem:[%s2496_s9 + $0xd0] sm:$0xff]  ;;  %v1137_v25 = vld [vmem:[%s2496_s9 + $0x28] sm:$0xff] }
 0x375   :  { %v1138_v23 = vld [vmem:[%s2496_s9 + $0x30] sm:$0xff] }
 0x376   :  { %1027 = vmatpush.msrb.mxu3 %v891_v26  ;;  %1071 = vmatpush.msrb.mxu1 %v891_v26  ;;  %v957_v37 = vadd.f32 %v956_v27, %v934_v34  ;;  %v1153_v26 = vld [vmem:[%s2496_s9 + $0xa8] sm:$0xff]  ;;  %v1136_v27 = vld [vmem:[%s2496_s9 + $0x20] sm:$0xff] }
 0x377   :  { %1188 = vmatpush.msra.mxu0 %v1138_v23  ;;  %v1149_v34 = vld [vmem:[%s2496_s9 + $0x88] sm:$0xff] }
 0x378   :  { %1028 = vmatpush.msrb.mxu3 %v888_v28  ;;  %1072 = vmatpush.msrb.mxu1 %v888_v28  ;;  %v1152_v28 = vld [vmem:[%s2496_s9 + $0xa0] sm:$0xff] }
 0x379   :  { %v979_v31 = vpop.f32.mrf.mxu3  ;;  %1338 = vmatmul.msk.f32.vlgmr.msrb.gmra.mxu3 %vm1009_vm14, %v1008_v29  ;;  %1340 = vmatmul.msk.f32.vlgmr.msrb.gmra.mxu1 %vm1009_vm14, %v1053_v30 }
 0x37a   :  { %v1002_v32 = vpop.f32.mrf.mxu2  ;;  %v980_v40 = vadd.f32 %v979_v31, %v957_v37  ;;  %1227 = vmatpush.msra.mxu1 %v1171_v51  ;;  %1189 = vmatpush.msra.mxu0 %v1137_v25  ;;  %v1134_v31 = vld [vmem:[%s2496_s9 + $0x10] sm:$0xff] }
 0x37b   :  { %v936_v33 = vpop.f32.mrf.mxu0 }
 0x37c   :  { %v937_v35 = vadd.f32 %v936_v33, %v913_v24  ;;  %v1003_v44 = vadd.f32 %v1002_v32, %v980_v40  ;;  %1228 = vmatpush.msra.mxu1 %v1170_v52  ;;  %v1154_v24 = vld [vmem:[%s2496_s9 + $0xb0] sm:$0xff]  ;;  %1190 = vmatpush.msra.mxu0 %v1136_v27  ;;  %v1133_v33 = vld [vmem:[%s2496_s9 + $0x8] sm:$0xff] }
 0x37d   :  { %v1150_v32 = vld [vmem:[%s2496_s9 + $0x90] sm:$0xff] }
 0x37e   :  { %v960_v38 = vadd.f32 %v959_v36, %v937_v35  ;;  %1229 = vmatpush.msra.mxu1 %v1169_v54  ;;  %v1132_v35 = vld [vmem:[%s2496_s9] sm:$0xff] }
 0x37f   :  { %v1148_v36 = vld [vmem:[%s2496_s9 + $0x80] sm:$0xff] }
 0x380   :  { %1230 = vmatpush.msra.mxu1 %v1168_v60 }
 0x381   :  { %v982_v39 = vpop.f32.mrf.mxu3 }
 0x382   :  { %v983_v41 = vadd.f32 %v982_v39, %v960_v38  ;;  %v1005_v42 = vpop.f32.mrf.mxu2  ;;  %1231 = vmatpush.msra.mxu1 %v1167_v62 }
 0x384   :  { %v1006_v43 = vadd.f32 %v1005_v42, %v983_v41  ;;  %1232 = vmatpush.msra.mxu1 %v1166_v10 }
 0x386   :  { %1047 = vmatpush.msra.mxu2 %v1006_v43  ;;  %1091 = vmatpush.msra.mxu3 %v1006_v43  ;;  %v1246_v43 = vld [vmem:[%s2498_s11 + $0x30] sm:$0x3] }
 0x387   :  { %1233 = vmatpush.msra.mxu1 %v1165_v63 }
 0x388   :  { %1048 = vmatpush.msra.mxu2 %v1003_v44  ;;  %1092 = vmatpush.msra.mxu3 %v1003_v44  ;;  %v1245_v44 = vld [vmem:[%s2498_s11 + $0x28] sm:$0xff] }
 0x389   :  { %1339 = vmatmul.msk.f32.vlgmr.msra.gmra.mxu2 %vm1009_vm14, %v1008_v29  ;;  %1341 = vmatmul.msk.f32.vlgmr.msra.gmra.mxu3 %vm1009_vm14, %v1053_v30  ;;  %v1135_v29 = vld [vmem:[%s2496_s9 + $0x18] sm:$0xff] }
 0x38a   :  { %1199 = vmatpush.msrb.mxu2 %v1163_v55  ;;  %1234 = vmatpush.msra.mxu1 %v1164_v0  ;;  %v1151_v30 = vld [vmem:[%s2496_s9 + $0x98] sm:$0xff] }
 0x38b   :  { %1191 = vmatpush.msra.mxu0 %v1135_v29  ;;  %1343 = vmatpush.msk.msrb.mxu3 %vm594_vm9, %v1246_v43 }
 0x38c   :  { %1200 = vmatpush.msrb.mxu2 %v1162_v57 }
 0x38d   :  { %1192 = vmatpush.msra.mxu0 %v1134_v31  ;;  %1268 = vmatpush.msrb.mxu3 %v1245_v44 }
 0x38e   :  { %1201 = vmatpush.msrb.mxu2 %v1161_v61 }
 0x38f   :  { %1193 = vmatpush.msra.mxu0 %v1133_v33 }
 0x390   :  { %1202 = vmatpush.msrb.mxu2 %v1160_v12 }
 0x391   :  { %1194 = vmatpush.msra.mxu0 %v1132_v35 }
 0x392   :  { %1203 = vmatpush.msrb.mxu2 %v1159_v14 }
 0x394   :  { %1204 = vmatpush.msrb.mxu2 %v1158_v16 }
 0x396   :  { %1205 = vmatpush.msrb.mxu2 %v1157_v18 }
 0x398   :  { %1206 = vmatpush.msrb.mxu2 %v1156_v20 }
 0x39a   :  { %1207 = vmatpush.msrb.mxu2 %v1155_v22 }
 0x39c   :  { %1208 = vmatpush.msrb.mxu2 %v1154_v24 }
 0x39e   :  { %1209 = vmatpush.msrb.mxu2 %v1153_v26 }
 0x3a0   :  { %1210 = vmatpush.msrb.mxu2 %v1152_v28 }
 0x3a2   :  { %1211 = vmatpush.msrb.mxu2 %v1151_v30 }
 0x3a4   :  { %1212 = vmatpush.msrb.mxu2 %v1150_v32 }
 0x3a6   :  { %1213 = vmatpush.msrb.mxu2 %v1149_v34 }
 0x3a8   :  { %1214 = vmatpush.msrb.mxu2 %v1148_v36 }
 0x3f6   :  { %v1074_v45 = vpop.f32.mrf.mxu1 }
 0x3fc   :  { %v1030_v46 = vpop.f32.mrf.mxu3 }
 0x3fd   :  { %v1097_v47 = vmax.f32 %v1030_v46, %v1074_v45  ;;  %v1244_v45 = vld [vmem:[%s2498_s11 + $0x20] sm:$0xff]  ;;  %v1243_v46 = vld [vmem:[%s2498_s11 + $0x18] sm:$0xff] }
 0x3fe   :  { %1269 = vmatpush.msrb.mxu3 %v1244_v45 }
 0x3ff   :  { %1101 = vrot.lane.b32.xlu1 %v1097_v47, %s1434_s6 }
 0x400   :  { %1270 = vmatpush.msrb.mxu3 %v1243_v46 }
 0x40c   :  { %v1050_v48 = vpop.f32.mrf.mxu2  ;;  %v1094_v49 = vpop.f32.mrf.mxu3 }
 0x40d   :  { %v1098_v50 = vmax.f32 %v1050_v48, %v1094_v49  ;;  %v1241_v48 = vld [vmem:[%s2498_s11 + $0x8] sm:$0xff]  ;;  %v1240_v49 = vld [vmem:[%s2498_s11] sm:$0xff] }
 0x40f   :  { %1103 = vrot.lane.b32.xlu2 %v1098_v50, %s1434_s6  ;;  %v1394_v50 = vld [vmem:[%s2497_s10] ss:$0 sm:$0xff]  ;;  %s1437_s10 = smov [#allocation2]  }
 0x469   :  { %v1104_v1 = vpop.permute.xlu2 %1103 }
 0x471   :  { %v1102_v2 = vpop.permute.xlu1 %1101 }
 0x472   :  { %v1105_v6 = vsel %vm398_vm6, %v1102_v2, %v1104_v1 }
 0x473   :  { %v1107_v4 = vmax.f32 %v1097_v47, %v1105_v6  ;;  %v1242_v47 = vld [vmem:[%s2498_s11 + $0x10] sm:$0xff]  ;;  %s1297_s11 = sshll.u32 %s1437_s10, 4  ;;  %s1298_s11 = int_to_ptr.vmem [resolvable:$true] %s1297_s11 }
 0x474   :  { %1271 = vmatpush.msrb.mxu3 %v1242_v47 }
 0x475   :  { %v1112_v5 = vadd.f32 %v1393_v3, %v1107_v4 }
 0x476   :  { %1272 = vmatpush.msrb.mxu3 %v1241_v48 }
 0x477   :  { %v2367_v7 = vmax.f32 %v1112_v5, 0.0 }
 0x478   :  { %1273 = vmatpush.msrb.mxu3 %v1240_v49 }
 0x479   :  { %v1123_v8 = vrot.slane %v2367_v7, 6  ;;  %v1119_v9 = vrot.slane %v2367_v7, 4  ;;  %v1115_v59 = vrot.slane %v2367_v7, 2 }
 0x47b   :  { %1124 = vrot.lane.b32.xlu2 %v1123_v8, %s1428_s24  ;;  %1120 = vrot.lane.b32.xlu1 %v1119_v9, %s1435_s3 }
 0x47c   :  { %1116 = vrot.lane.b32.xlu0 %v1115_v59, %s1436_s21 }
 0x4d5   :  { %v1125_v37 = vpop.permute.xlu2 %1124 }
 0x4d6   :  { %1342 = vmatmul.msk.f32.vlgmr.msra.gmra.mxu1 %vm1176_vm15, %v1125_v37 }
 0x4ed   :  { %v1121_v38 = vpop.permute.xlu1 %1120 }
 0x4ee   :  { %v1117_v39 = vpop.permute.xlu0 %1116 }
 0x4ef   :  { %v1128_v40 = vsel %vm1127_vm0, %v2367_v7, %v1117_v39  ;;  %v1130_v41 = vsel %vm1129_vm1, %v1117_v39, %v1121_v38 }
 0x4f0   :  { %1195 = vmatmul.f32.vlgmr.msra.gmra.mxu0 %v1128_v40  ;;  %v1131_v42 = vsel %vm192_vm5, %v1130_v41, %v1125_v37 }
 0x4f1   :  { %1215 = vmatmul.f32.vlgmr.msrb.gmra.mxu2 %v1131_v42 }
 0x553   :  { %v1236_v55 = vpop.f32.mrf.mxu1 }
 0x56d   :  { %v1196_v51 = vpop.f32.mrf.mxu0 }
 0x56e   :  { %v1197_v52 = vadd.f32 %v1394_v50, %v1196_v51 }
 0x574   :  { %v1216_v53 = vpop.f32.mrf.mxu2 }
 0x575   :  { %v1217_v54 = vadd.f32 %v1216_v53, %v1197_v52 }
 0x577   :  { %v1237_v56 = vadd.f32 %v1236_v55, %v1217_v54 }
 0x579   :  { %v1239_v57 = vmax.f32 %v1237_v56, 0.0 }
 0x57b   :  { %1344 = vmatmul.msk.f32.vlgmr.msrb.gmra.mxu3 %vm1251_vm2, %v1239_v57 }
 0x5fe   :  { %v1275_v60 = vpop.f32.mrf.mxu3 }
 0x5ff   :  { %v1276_v61 = vadd.f32 %v1395_v58, %v1275_v60 }
 0x601   :  { %v1279_v62 = vsel %vm1278_vm3, %v1276_v61, -inf }
 0x602   :  { %1280 = vmax.xlane.f32.xlu0 %v1279_v62 }
 0x675   :  { %v1281_v10 = vpop.xlane.xlu0 %1280 }
 0x676   :  { %v1282_v63 = vsub.f32 %v1276_v61, %v1281_v10 }
 0x678   :  { %v1283_v0 = vmul.f32 1.442695, %v1282_v63 }
 0x67a   :  { %1396 = vpow2.f32 %v1283_v0 }
 0x680   :  { %v1397_v1 = vpop.eup %1396 }
 0x681   :  { %v1285_v2 = vsel %vm1278_vm3, %v1397_v1, 0.0 }
 0x682   :  { %1286 = vadd.xlane.f32.xlu1 %v1285_v2 }
 0x6f5   :  { %v1287_v3 = vpop.xlane.xlu1 %1286 }
 0x6f6   :  { %1398 = vlog2.f32 %v1287_v3 }
 0x6fc   :  { %v1399_v6 = vpop.eup %1398 }
 0x6fd   :  { %v1289_v4 = vmul.f32 0.6931472, %v1399_v6 }
 0x6ff   :  { %v1290_v5 = vsub.f32 %v1282_v63, %v1289_v4 }
 0x701   :  { %1291 = vst.msk [vmem:[#allocation2] sm:$0x3] %vm1278_vm3, %v1290_v5 }
 0x702   :  { %1302 = dma.vmem_to_hbm [thread:$0]  %s1298_s11, 32, %s1300_s7, [#allocation3]  }
 0x703   :  { %1424 = dma.done.wait [#allocation3], 32  }
 0x704   :  { %1425 = vsyncadd [#allocation3], 4294967264 }
 0x705   :  { %1307 = vsyncpa [#allocation3], 1 }

</bundles_post_ra>
